<compile_context>
chip_gen: v5e
topology: v5e:2x2
jax: 0.10.0
libtpu: 0.0.40
codegen_flags: <defaults>
</compile_context>

<pallas_src>
import functools
import math

import jax
import jax.numpy as jnp
from jax.experimental import pallas as pl
from jax.experimental.pallas import tpu as pltpu

# Make the kernel's and the reference's f32 matmuls use the same (full f32)
# pass structure so the correctness check is not polluted by TPU default
# low-precision matmul passes.
jax.config.update("jax_default_matmul_precision", "highest")

LN_EPS = 1e-5  # torch.nn.LayerNorm default


def _layernorm(x, gamma, beta):
    mu = jnp.mean(x, axis=-1, keepdims=True)
    var = jnp.mean((x - mu) ** 2, axis=-1, keepdims=True)
    return (x - mu) * jax.lax.rsqrt(var + LN_EPS) * gamma + beta


def _softmax_rows(s):
    # Exact softmax in f32. (pl.reciprocal(approx=True) caused the previous
    # mismatch; an exact divide still lands on the EUP and is ~free here.)
    s = s - jnp.max(s, axis=-1, keepdims=True)
    p = jnp.exp(s)
    return p / jnp.sum(p, axis=-1, keepdims=True)


def isab_kernel(x_ref, ind_ref,
                wq0_ref, wkv0_ref, wfc0_ref, vec0_ref,
                wq1_ref, wkv1_ref, wfc1_ref, vec1_ref,
                out_ref, *, dq, dq_pad, compute_dtype):
    """One batch slice per grid step; both AttentionBlocks fused."""
    f32 = jnp.float32
    scale = 1.0 / math.sqrt(float(dq))

    x = x_ref[...].astype(f32)      # [S, H]  residual / LN inputs stay f32
    ind = ind_ref[...].astype(f32)  # [M, H]

    def unpack(vec_ref):
        v = vec_ref[...]
        # rows: 0=bfc, 1=gamma0, 2=beta0, 3=gamma1, 4=beta1 (rows 5..7 pad)
        return v[0:1], v[1:2], v[2:3], v[3:4], v[4:5]

    def attention_block(q, h, wqT_ref, wkvT_ref, wfcT_ref, vec_ref):
        bfc, g0, b0, g1, b1 = unpack(vec_ref)
        qc = q.astype(compute_dtype)
        hc = h.astype(compute_dtype)
        # Projections: weights pre-transposed, K|V fused (K half padded to a
        # 128-lane boundary so the split below is lane-aligned).
        qq = jnp.dot(qc, wqT_ref[...], preferred_element_type=f32)    # [Nq, Dqp]
        kv = jnp.dot(hc, wkvT_ref[...], preferred_element_type=f32)   # [Nh, Dqp+H]
        k, v = kv[:, :dq_pad], kv[:, dq_pad:]
        # qq @ k^T without materializing a transpose (contract last dims).
        s = jax.lax.dot_general(qq, k, (((1,), (1,)), ((), ())),
                                preferred_element_type=f32) * scale   # [Nq, Nh]
        a = _softmax_rows(s)
        att = jnp.dot(a.astype(compute_dtype), v.astype(compute_dtype),
                      preferred_element_type=f32)                     # [Nq, H]
        x0 = _layernorm(q + att, g0, b0)          # broadcast residual, f32
        hres = jnp.dot(x0.astype(compute_dtype), wfcT_ref[...],
                       preferred_element_type=f32) + bfc
        return _layernorm(x0 + jnp.maximum(hres, 0.0), g1, b1)

    # AttentionBlock 0: shared inducing-point queries, keys/values from x_b.
    h0 = attention_block(ind, x, wq0_ref, wkv0_ref, wfc0_ref, vec0_ref)  # [M, H]
    # AttentionBlock 1: queries = x_b, keys/values from h0.
    y = attention_block(x, h0, wq1_ref, wkv1_ref, wfc1_ref, vec1_ref)    # [S, H]

    out_ref[...] = y.astype(out_ref.dtype)


def _round_up(n, m):
    return ((n + m - 1) // m) * m


def prepare_isab_params(params, *, compute_dtype=jnp.float32):
    """One-time prep: transpose, fuse K|V, pad Dq to a lane boundary, pack the
    five [H] vectors per block into one (8, H) slab. Call once, not per-forward."""
    ind = jnp.asarray(params["i"], jnp.float32)
    h = int(ind.shape[1])
    dq = int(params["ab0"]["WQ"].shape[0])
    dq_pad = _round_up(dq, 128)  # K half of fused KV ends on a 128-lane boundary

    def prep_block(p):
        wqT = jnp.zeros((h, dq_pad), jnp.float32).at[:, :dq].set(jnp.asarray(p["WQ"]).T)
        wkT = jnp.zeros((h, dq_pad), jnp.float32).at[:, :dq].set(jnp.asarray(p["WK"]).T)
        wkvT = jnp.concatenate([wkT, jnp.asarray(p["WV"]).T], axis=1)   # [H, Dqp+H]
        wfcT = jnp.asarray(p["Wfc"]).T                                  # [H, H]
        vec = jnp.zeros((8, h), jnp.float32)
        vec = (vec.at[0].set(p["bfc"]).at[1].set(p["g0"]).at[2].set(p["b0"])
                  .at[3].set(p["g1"]).at[4].set(p["b1"]))               # [8, H]
        # Matmul weights shipped in compute_dtype (bf16 halves DMA on v6e/v7x);
        # the LN/bias slab stays f32 (VPU work).
        return (wqT.astype(compute_dtype), wkvT.astype(compute_dtype),
                wfcT.astype(compute_dtype), vec)

    return {
        "ind": ind, "dq": dq, "dq_pad": dq_pad, "compute_dtype": compute_dtype,
        "ab0": prep_block(params["ab0"]),
        "ab1": prep_block(params["ab1"]),
    }


def isab_forward(x, prepped, *, num_batches, slice_len):
    """x: [B*S, H] float32 -> [B*S, H] float32."""
    B, S = num_batches, slice_len
    BS, H = x.shape
    assert BS == B * S, "x rows must equal num_batches * slice_len"
    # TODO(synk): ragged xlens (unequal per-batch slice lengths) unsupported.
    ind = prepped["ind"]
    M = ind.shape[0]
    dq, dq_pad = prepped["dq"], prepped["dq_pad"]
    wq0, wkv0, wfc0, vec0 = prepped["ab0"]
    wq1, wkv1, wfc1, vec1 = prepped["ab1"]

    kernel = functools.partial(isab_kernel, dq=dq, dq_pad=dq_pad,
                               compute_dtype=prepped["compute_dtype"])

    # Weights / inducing points: constant block index -> stay VMEM-resident
    # across the whole batch grid (DMA'd once).
    resident = lambda arr: pl.BlockSpec(arr.shape, lambda b: (0, 0))

    in_specs = [
        pl.BlockSpec((S, H), lambda b: (b, 0)),   # x: one batch slice per step
        resident(ind),
        resident(wq0), resident(wkv0), resident(wfc0), resident(vec0),
        resident(wq1), resident(wkv1), resident(wfc1), resident(vec1),
    ]
    out_spec = pl.BlockSpec((S, H), lambda b: (b, 0))

    mm = lambda m, k, n: 2 * m * k * n
    per_batch_flops = (
        mm(M, H, dq_pad) + mm(S, H, dq_pad + H) + mm(M, dq_pad, S)
        + mm(M, S, H) + mm(M, H, H)                      # ab0
        + mm(S, H, dq_pad) + mm(M, H, dq_pad + H) + mm(S, dq_pad, M)
        + mm(S, M, H) + mm(S, H, H))                     # ab1
    weight_bytes = sum(int(w.size) * w.dtype.itemsize
                       for w in (ind, wq0, wkv0, wfc0, vec0, wq1, wkv1, wfc1, vec1))
    cost = pl.CostEstimate(
        flops=B * per_batch_flops,
        transcendentals=2 * B * M * S,                   # exp in both softmaxes
        bytes_accessed=2 * int(x.size) * x.dtype.itemsize + weight_bytes)

    return pl.pallas_call(
        kernel,
        out_shape=jax.ShapeDtypeStruct((B * S, H), jnp.float32),
        grid=(B,),
        in_specs=in_specs,
        out_specs=out_spec,
        compiler_params=pltpu.CompilerParams(
            dimension_semantics=("parallel",)),          # v7x: 2 TCs share batches
        cost_estimate=cost,
    )(x, ind, wq0, wkv0, wfc0, vec0, wq1, wkv1, wfc1, vec1)


# ----------------------------- plain-JAX reference -----------------------------

def _unbatch_slices(n, lens):
    if lens:
        c = [0]
        for l in lens:
            c.append(c[-1] + int(l))
        return list(zip(c[:-1], c[1:]))
    return [(0, n)]


def attention_block_reference(q, qlens, h, hlens, p):
    Dq = p["WQ"].shape[0]
    qq = q @ p["WQ"].T
    k = h @ p["WK"].T
    v = h @ p["WV"].T
    qsl = _unbatch_slices(q.shape[0], qlens)
    hsl = _unbatch_slices(h.shape[0], hlens)
    if not qlens:
        qsl = qsl * len(hsl)
    outs = []
    for (qs, qe), (hs, he) in zip(qsl, hsl):
        s = (qq[qs:qe] @ k[hs:he].T) / jnp.sqrt(jnp.float32(Dq))
        a = jax.nn.softmax(s, axis=-1)
        outs.append(a @ v[hs:he])
    att = jnp.concatenate(outs, axis=0)
    att = att.reshape(-1, q.shape[0], att.shape[-1])
    x0 = _layernorm(q[None] + att, p["g0"], p["b0"]).reshape(-1, q.shape[-1])
    hres = x0 @ p["Wfc"].T + p["bfc"]
    return _layernorm(x0 + jnp.maximum(hres, 0.0), p["g1"], p["b1"])


def isab_reference(x, xlens, params):
    h = attention_block_reference(params["i"], None, x, xlens, params["ab0"])
    M = params["i"].shape[0]
    hlens = [M] * (h.shape[0] // M)
    return attention_block_reference(x, xlens, h, hlens, params["ab1"])


def make_attention_block_params(key, hidden_dims, query_dims):
    ks = jax.random.split(key, 5)
    s = 1.0 / math.sqrt(hidden_dims)
    u = lambda k, shape: jax.random.uniform(k, shape, jnp.float32, -s, s)
    return {
        "WQ": u(ks[0], (query_dims, hidden_dims)),
        "WK": u(ks[1], (query_dims, hidden_dims)),
        "WV": u(ks[2], (hidden_dims, hidden_dims)),
        "Wfc": u(ks[3], (hidden_dims, hidden_dims)),
        "bfc": u(ks[4], (hidden_dims,)),
        "g0": jnp.ones((hidden_dims,), jnp.float32),
        "b0": jnp.zeros((hidden_dims,), jnp.float32),
        "g1": jnp.ones((hidden_dims,), jnp.float32),
        "b1": jnp.zeros((hidden_dims,), jnp.float32),
    }


if __name__ == "__main__":
    hidden_dims, query_dims, inducing_points = 32, 16, 8
    B, S = 2, 8                        # xlens = [8, 8]

    key = jax.random.PRNGKey(0)
    kx, ki, k0, k1 = jax.random.split(key, 4)
    x = jax.random.normal(kx, (B * S, hidden_dims), jnp.float32)
    params = {
        "i": jax.random.uniform(ki, (inducing_points, hidden_dims),
                                jnp.float32, 0.0, 1.0),   # torch nn.init.uniform_
        "ab0": make_attention_block_params(k0, hidden_dims, query_dims),
        "ab1": make_attention_block_params(k1, hidden_dims, query_dims),
    }
    ref = isab_reference(x, [S] * B, params)

    # f32 MXU operands: directly comparable against the plain-JAX reference.
    prepped_f32 = prepare_isab_params(params, compute_dtype=jnp.float32)
    y = jax.block_until_ready(isab_forward(x, prepped_f32, num_batches=B, slice_len=S))
    assert y.shape == (B * S, hidden_dims)
    # 5e-3 absorbs TPU matmul-pass / accumulation-order differences; any real
    # semantic bug (wrong residual / LN / slicing) shows up as O(0.1..1) error.
    assert jnp.allclose(y, ref, atol=5e-3, rtol=5e-3), "mismatch vs JAX reference"

    # bf16 MXU operands (production setting for v6e/v7x; f32 accumulate/LN/softmax).
    prepped_bf16 = prepare_isab_params(params, compute_dtype=jnp.bfloat16)
    y_bf16 = jax.block_until_ready(
        isab_forward(x, prepped_bf16, num_batches=B, slice_len=S))
    assert jnp.allclose(y_bf16, ref, atol=1e-1, rtol=1e-1), "bf16 path diverged"

    print("KERNEL_OK")
</pallas_src>

<mosaic_0001>
module attributes {stable_mosaic.version = 11 : i64} {
  func.func @isab_kernel(%arg0: i32, %arg1: memref<8x32xf32, #tpu.memory_space<vmem>>, %arg2: memref<8x32xf32, #tpu.memory_space<vmem>>, %arg3: memref<32x128xf32, #tpu.memory_space<vmem>>, %arg4: memref<32x160xf32, #tpu.memory_space<vmem>>, %arg5: memref<32x32xf32, #tpu.memory_space<vmem>>, %arg6: memref<8x32xf32, #tpu.memory_space<vmem>>, %arg7: memref<32x128xf32, #tpu.memory_space<vmem>>, %arg8: memref<32x160xf32, #tpu.memory_space<vmem>>, %arg9: memref<32x32xf32, #tpu.memory_space<vmem>>, %arg10: memref<8x32xf32, #tpu.memory_space<vmem>>, %arg11: memref<8x32xf32, #tpu.memory_space<vmem>>) attributes {dimension_semantics = [#tpu.dimension_semantics<parallel>], iteration_bounds = array<i64: 2>, scalar_prefetch = 0 : i64, scratch_operands = 0 : i64, tpu.core_type = #tpu.core_type<tc>, window_params = [{transform_indices = @transform_0, window_bounds = array<i64: 8, 32>}, {pipeline_mode = #tpu.pipeline_mode<synchronous>, transform_indices = @transform_1, window_bounds = array<i64: 8, 32>}, {pipeline_mode = #tpu.pipeline_mode<synchronous>, transform_indices = @transform_2, window_bounds = array<i64: 32, 128>}, {pipeline_mode = #tpu.pipeline_mode<synchronous>, transform_indices = @transform_3, window_bounds = array<i64: 32, 160>}, {pipeline_mode = #tpu.pipeline_mode<synchronous>, transform_indices = @transform_4, window_bounds = array<i64: 32, 32>}, {pipeline_mode = #tpu.pipeline_mode<synchronous>, transform_indices = @transform_5, window_bounds = array<i64: 8, 32>}, {pipeline_mode = #tpu.pipeline_mode<synchronous>, transform_indices = @transform_6, window_bounds = array<i64: 32, 128>}, {pipeline_mode = #tpu.pipeline_mode<synchronous>, transform_indices = @transform_7, window_bounds = array<i64: 32, 160>}, {pipeline_mode = #tpu.pipeline_mode<synchronous>, transform_indices = @transform_8, window_bounds = array<i64: 32, 32>}, {pipeline_mode = #tpu.pipeline_mode<synchronous>, transform_indices = @transform_9, window_bounds = array<i64: 8, 32>}, {transform_indices = @transform_10, window_bounds = array<i64: 8, 32>}]} {
    %c0 = arith.constant 0 : index
    %c0_0 = arith.constant 0 : index
    %0 = vector.load %arg1[%c0, %c0_0] : memref<8x32xf32, #tpu.memory_space<vmem>>, vector<8x32xf32>
    %c0_1 = arith.constant 0 : index
    %c0_2 = arith.constant 0 : index
    %1 = vector.load %arg2[%c0_1, %c0_2] : memref<8x32xf32, #tpu.memory_space<vmem>>, vector<8x32xf32>
    %c0_3 = arith.constant 0 : index
    %c0_4 = arith.constant 0 : index
    %2 = vector.load %arg6[%c0_3, %c0_4] : memref<8x32xf32, #tpu.memory_space<vmem>>, vector<8x32xf32>
    %3 = vector.extract_strided_slice %2 {offsets = [0, 0], sizes = [1, 32], strides = [1, 1]} : vector<8x32xf32> to vector<1x32xf32>
    %4 = vector.extract_strided_slice %2 {offsets = [1, 0], sizes = [1, 32], strides = [1, 1]} : vector<8x32xf32> to vector<1x32xf32>
    %5 = vector.extract_strided_slice %2 {offsets = [2, 0], sizes = [1, 32], strides = [1, 1]} : vector<8x32xf32> to vector<1x32xf32>
    %6 = vector.extract_strided_slice %2 {offsets = [3, 0], sizes = [1, 32], strides = [1, 1]} : vector<8x32xf32> to vector<1x32xf32>
    %7 = vector.extract_strided_slice %2 {offsets = [4, 0], sizes = [1, 32], strides = [1, 1]} : vector<8x32xf32> to vector<1x32xf32>
    %c0_5 = arith.constant 0 : index
    %c0_6 = arith.constant 0 : index
    %8 = vector.load %arg3[%c0_5, %c0_6] : memref<32x128xf32, #tpu.memory_space<vmem>>, vector<32x128xf32>
    %cst = arith.constant dense<0.000000e+00> : vector<8x128xf32>
    %9 = tpu.matmul %1, %8, %cst {dimension_numbers = #tpu.dot_dimension_numbers<[1], [0], [0], [1], [0, 0, 1, 1], [], []>, precision = #tpu.contract_precision<fp32>} : vector<8x32xf32>, vector<32x128xf32>, vector<8x128xf32> -> vector<8x128xf32>
    %c0_7 = arith.constant 0 : index
    %c0_8 = arith.constant 0 : index
    %10 = vector.load %arg4[%c0_7, %c0_8] : memref<32x160xf32, #tpu.memory_space<vmem>>, vector<32x160xf32>
    %cst_9 = arith.constant dense<0.000000e+00> : vector<8x160xf32>
    %11 = tpu.matmul %0, %10, %cst_9 {dimension_numbers = #tpu.dot_dimension_numbers<[1], [0], [0], [1], [0, 0, 1, 1], [], []>, precision = #tpu.contract_precision<fp32>} : vector<8x32xf32>, vector<32x160xf32>, vector<8x160xf32> -> vector<8x160xf32>
    %12 = vector.extract_strided_slice %11 {offsets = [0, 0], sizes = [8, 128], strides = [1, 1]} : vector<8x160xf32> to vector<8x128xf32>
    %13 = vector.extract_strided_slice %11 {offsets = [0, 128], sizes = [8, 32], strides = [1, 1]} : vector<8x160xf32> to vector<8x32xf32>
    %cst_10 = arith.constant dense<0.000000e+00> : vector<8x8xf32>
    %14 = tpu.matmul %9, %12, %cst_10 {dimension_numbers = #tpu.dot_dimension_numbers<[1], [1], [0], [0], [0, 0, 1, 0], [], []>, precision = #tpu.contract_precision<fp32>} : vector<8x128xf32>, vector<8x128xf32>, vector<8x8xf32> -> vector<8x8xf32>
    %cst_11 = arith.constant 2.500000e-01 : f32
    %15 = vector.broadcast %cst_11 : f32 to vector<8x8xf32>
    %16 = arith.mulf %14, %15 : vector<8x8xf32>
    %cst_12 = arith.constant dense<0xFF800000> : vector<8xf32>
    %17 = vector.multi_reduction <maximumf>, %16, %cst_12 [1] : vector<8x8xf32> to vector<8xf32>
    %18 = vector.shape_cast %17 : vector<8xf32> to vector<8x1xf32>
    %19 = vector.broadcast %18 : vector<8x1xf32> to vector<8x8xf32>
    %20 = arith.subf %16, %19 : vector<8x8xf32>
    %21 = math.exp %20 : vector<8x8xf32>
    %cst_13 = arith.constant dense<0.000000e+00> : vector<8xf32>
    %22 = vector.multi_reduction <add>, %21, %cst_13 [1] : vector<8x8xf32> to vector<8xf32>
    %23 = vector.shape_cast %22 : vector<8xf32> to vector<8x1xf32>
    %24 = vector.broadcast %23 : vector<8x1xf32> to vector<8x8xf32>
    %25 = arith.divf %21, %24 : vector<8x8xf32>
    %cst_14 = arith.constant dense<0.000000e+00> : vector<8x32xf32>
    %26 = tpu.matmul %25, %13, %cst_14 {dimension_numbers = #tpu.dot_dimension_numbers<[1], [0], [0], [1], [0, 0, 1, 1], [], []>, precision = #tpu.contract_precision<fp32>} : vector<8x8xf32>, vector<8x32xf32>, vector<8x32xf32> -> vector<8x32xf32>
    %27 = arith.addf %1, %26 : vector<8x32xf32>
    %cst_15 = arith.constant dense<0.000000e+00> : vector<8xf32>
    %28 = vector.multi_reduction <add>, %27, %cst_15 [1] : vector<8x32xf32> to vector<8xf32>
    %29 = vector.shape_cast %28 : vector<8xf32> to vector<8x1xf32>
    %cst_16 = arith.constant 3.200000e+01 : f32
    %30 = vector.broadcast %cst_16 : f32 to vector<8x1xf32>
    %31 = arith.divf %29, %30 : vector<8x1xf32>
    %32 = vector.broadcast %31 : vector<8x1xf32> to vector<8x32xf32>
    %33 = arith.subf %27, %32 : vector<8x32xf32>
    %34 = arith.mulf %33, %33 : vector<8x32xf32>
    %cst_17 = arith.constant dense<0.000000e+00> : vector<8xf32>
    %35 = vector.multi_reduction <add>, %34, %cst_17 [1] : vector<8x32xf32> to vector<8xf32>
    %36 = vector.shape_cast %35 : vector<8xf32> to vector<8x1xf32>
    %cst_18 = arith.constant 3.200000e+01 : f32
    %37 = vector.broadcast %cst_18 : f32 to vector<8x1xf32>
    %38 = arith.divf %36, %37 : vector<8x1xf32>
    %39 = vector.broadcast %31 : vector<8x1xf32> to vector<8x32xf32>
    %40 = arith.subf %27, %39 : vector<8x32xf32>
    %cst_19 = arith.constant 9.99999974E-6 : f32
    %41 = vector.broadcast %cst_19 : f32 to vector<8x1xf32>
    %42 = arith.addf %38, %41 : vector<8x1xf32>
    %43 = math.rsqrt %42 : vector<8x1xf32>
    %44 = vector.broadcast %43 : vector<8x1xf32> to vector<8x32xf32>
    %45 = arith.mulf %40, %44 : vector<8x32xf32>
    %46 = vector.broadcast %4 : vector<1x32xf32> to vector<8x32xf32>
    %47 = arith.mulf %45, %46 : vector<8x32xf32>
    %48 = vector.broadcast %5 : vector<1x32xf32> to vector<8x32xf32>
    %49 = arith.addf %47, %48 : vector<8x32xf32>
    %c0_20 = arith.constant 0 : index
    %c0_21 = arith.constant 0 : index
    %50 = vector.load %arg5[%c0_20, %c0_21] : memref<32x32xf32, #tpu.memory_space<vmem>>, vector<32x32xf32>
    %cst_22 = arith.constant dense<0.000000e+00> : vector<8x32xf32>
    %51 = tpu.matmul %49, %50, %cst_22 {dimension_numbers = #tpu.dot_dimension_numbers<[1], [0], [0], [1], [0, 0, 1, 1], [], []>, precision = #tpu.contract_precision<fp32>} : vector<8x32xf32>, vector<32x32xf32>, vector<8x32xf32> -> vector<8x32xf32>
    %52 = vector.broadcast %3 : vector<1x32xf32> to vector<8x32xf32>
    %53 = arith.addf %51, %52 : vector<8x32xf32>
    %cst_23 = arith.constant 0.000000e+00 : f32
    %54 = vector.broadcast %cst_23 : f32 to vector<8x32xf32>
    %55 = arith.maximumf %53, %54 : vector<8x32xf32>
    %56 = arith.addf %49, %55 : vector<8x32xf32>
    %cst_24 = arith.constant dense<0.000000e+00> : vector<8xf32>
    %57 = vector.multi_reduction <add>, %56, %cst_24 [1] : vector<8x32xf32> to vector<8xf32>
    %58 = vector.shape_cast %57 : vector<8xf32> to vector<8x1xf32>
    %cst_25 = arith.constant 3.200000e+01 : f32
    %59 = vector.broadcast %cst_25 : f32 to vector<8x1xf32>
    %60 = arith.divf %58, %59 : vector<8x1xf32>
    %61 = vector.broadcast %60 : vector<8x1xf32> to vector<8x32xf32>
    %62 = arith.subf %56, %61 : vector<8x32xf32>
    %63 = arith.mulf %62, %62 : vector<8x32xf32>
    %cst_26 = arith.constant dense<0.000000e+00> : vector<8xf32>
    %64 = vector.multi_reduction <add>, %63, %cst_26 [1] : vector<8x32xf32> to vector<8xf32>
    %65 = vector.shape_cast %64 : vector<8xf32> to vector<8x1xf32>
    %cst_27 = arith.constant 3.200000e+01 : f32
    %66 = vector.broadcast %cst_27 : f32 to vector<8x1xf32>
    %67 = arith.divf %65, %66 : vector<8x1xf32>
    %68 = vector.broadcast %60 : vector<8x1xf32> to vector<8x32xf32>
    %69 = arith.subf %56, %68 : vector<8x32xf32>
    %cst_28 = arith.constant 9.99999974E-6 : f32
    %70 = vector.broadcast %cst_28 : f32 to vector<8x1xf32>
    %71 = arith.addf %67, %70 : vector<8x1xf32>
    %72 = math.rsqrt %71 : vector<8x1xf32>
    %73 = vector.broadcast %72 : vector<8x1xf32> to vector<8x32xf32>
    %74 = arith.mulf %69, %73 : vector<8x32xf32>
    %75 = vector.broadcast %6 : vector<1x32xf32> to vector<8x32xf32>
    %76 = arith.mulf %74, %75 : vector<8x32xf32>
    %77 = vector.broadcast %7 : vector<1x32xf32> to vector<8x32xf32>
    %78 = arith.addf %76, %77 : vector<8x32xf32>
    %c0_29 = arith.constant 0 : index
    %c0_30 = arith.constant 0 : index
    %79 = vector.load %arg10[%c0_29, %c0_30] : memref<8x32xf32, #tpu.memory_space<vmem>>, vector<8x32xf32>
    %80 = vector.extract_strided_slice %79 {offsets = [0, 0], sizes = [1, 32], strides = [1, 1]} : vector<8x32xf32> to vector<1x32xf32>
    %81 = vector.extract_strided_slice %79 {offsets = [1, 0], sizes = [1, 32], strides = [1, 1]} : vector<8x32xf32> to vector<1x32xf32>
    %82 = vector.extract_strided_slice %79 {offsets = [2, 0], sizes = [1, 32], strides = [1, 1]} : vector<8x32xf32> to vector<1x32xf32>
    %83 = vector.extract_strided_slice %79 {offsets = [3, 0], sizes = [1, 32], strides = [1, 1]} : vector<8x32xf32> to vector<1x32xf32>
    %84 = vector.extract_strided_slice %79 {offsets = [4, 0], sizes = [1, 32], strides = [1, 1]} : vector<8x32xf32> to vector<1x32xf32>
    %c0_31 = arith.constant 0 : index
    %c0_32 = arith.constant 0 : index
    %85 = vector.load %arg7[%c0_31, %c0_32] : memref<32x128xf32, #tpu.memory_space<vmem>>, vector<32x128xf32>
    %cst_33 = arith.constant dense<0.000000e+00> : vector<8x128xf32>
    %86 = tpu.matmul %0, %85, %cst_33 {dimension_numbers = #tpu.dot_dimension_numbers<[1], [0], [0], [1], [0, 0, 1, 1], [], []>, precision = #tpu.contract_precision<fp32>} : vector<8x32xf32>, vector<32x128xf32>, vector<8x128xf32> -> vector<8x128xf32>
    %c0_34 = arith.constant 0 : index
    %c0_35 = arith.constant 0 : index
    %87 = vector.load %arg8[%c0_34, %c0_35] : memref<32x160xf32, #tpu.memory_space<vmem>>, vector<32x160xf32>
    %cst_36 = arith.constant dense<0.000000e+00> : vector<8x160xf32>
    %88 = tpu.matmul %78, %87, %cst_36 {dimension_numbers = #tpu.dot_dimension_numbers<[1], [0], [0], [1], [0, 0, 1, 1], [], []>, precision = #tpu.contract_precision<fp32>} : vector<8x32xf32>, vector<32x160xf32>, vector<8x160xf32> -> vector<8x160xf32>
    %89 = vector.extract_strided_slice %88 {offsets = [0, 0], sizes = [8, 128], strides = [1, 1]} : vector<8x160xf32> to vector<8x128xf32>
    %90 = vector.extract_strided_slice %88 {offsets = [0, 128], sizes = [8, 32], strides = [1, 1]} : vector<8x160xf32> to vector<8x32xf32>
    %cst_37 = arith.constant dense<0.000000e+00> : vector<8x8xf32>
    %91 = tpu.matmul %86, %89, %cst_37 {dimension_numbers = #tpu.dot_dimension_numbers<[1], [1], [0], [0], [0, 0, 1, 0], [], []>, precision = #tpu.contract_precision<fp32>} : vector<8x128xf32>, vector<8x128xf32>, vector<8x8xf32> -> vector<8x8xf32>
    %cst_38 = arith.constant 2.500000e-01 : f32
    %92 = vector.broadcast %cst_38 : f32 to vector<8x8xf32>
    %93 = arith.mulf %91, %92 : vector<8x8xf32>
    %cst_39 = arith.constant dense<0xFF800000> : vector<8xf32>
    %94 = vector.multi_reduction <maximumf>, %93, %cst_39 [1] : vector<8x8xf32> to vector<8xf32>
    %95 = vector.shape_cast %94 : vector<8xf32> to vector<8x1xf32>
    %96 = vector.broadcast %95 : vector<8x1xf32> to vector<8x8xf32>
    %97 = arith.subf %93, %96 : vector<8x8xf32>
    %98 = math.exp %97 : vector<8x8xf32>
    %cst_40 = arith.constant dense<0.000000e+00> : vector<8xf32>
    %99 = vector.multi_reduction <add>, %98, %cst_40 [1] : vector<8x8xf32> to vector<8xf32>
    %100 = vector.shape_cast %99 : vector<8xf32> to vector<8x1xf32>
    %101 = vector.broadcast %100 : vector<8x1xf32> to vector<8x8xf32>
    %102 = arith.divf %98, %101 : vector<8x8xf32>
    %cst_41 = arith.constant dense<0.000000e+00> : vector<8x32xf32>
    %103 = tpu.matmul %102, %90, %cst_41 {dimension_numbers = #tpu.dot_dimension_numbers<[1], [0], [0], [1], [0, 0, 1, 1], [], []>, precision = #tpu.contract_precision<fp32>} : vector<8x8xf32>, vector<8x32xf32>, vector<8x32xf32> -> vector<8x32xf32>
    %104 = arith.addf %0, %103 : vector<8x32xf32>
    %cst_42 = arith.constant dense<0.000000e+00> : vector<8xf32>
    %105 = vector.multi_reduction <add>, %104, %cst_42 [1] : vector<8x32xf32> to vector<8xf32>
    %106 = vector.shape_cast %105 : vector<8xf32> to vector<8x1xf32>
    %cst_43 = arith.constant 3.200000e+01 : f32
    %107 = vector.broadcast %cst_43 : f32 to vector<8x1xf32>
    %108 = arith.divf %106, %107 : vector<8x1xf32>
    %109 = vector.broadcast %108 : vector<8x1xf32> to vector<8x32xf32>
    %110 = arith.subf %104, %109 : vector<8x32xf32>
    %111 = arith.mulf %110, %110 : vector<8x32xf32>
    %cst_44 = arith.constant dense<0.000000e+00> : vector<8xf32>
    %112 = vector.multi_reduction <add>, %111, %cst_44 [1] : vector<8x32xf32> to vector<8xf32>
    %113 = vector.shape_cast %112 : vector<8xf32> to vector<8x1xf32>
    %cst_45 = arith.constant 3.200000e+01 : f32
    %114 = vector.broadcast %cst_45 : f32 to vector<8x1xf32>
    %115 = arith.divf %113, %114 : vector<8x1xf32>
    %116 = vector.broadcast %108 : vector<8x1xf32> to vector<8x32xf32>
    %117 = arith.subf %104, %116 : vector<8x32xf32>
    %cst_46 = arith.constant 9.99999974E-6 : f32
    %118 = vector.broadcast %cst_46 : f32 to vector<8x1xf32>
    %119 = arith.addf %115, %118 : vector<8x1xf32>
    %120 = math.rsqrt %119 : vector<8x1xf32>
    %121 = vector.broadcast %120 : vector<8x1xf32> to vector<8x32xf32>
    %122 = arith.mulf %117, %121 : vector<8x32xf32>
    %123 = vector.broadcast %81 : vector<1x32xf32> to vector<8x32xf32>
    %124 = arith.mulf %122, %123 : vector<8x32xf32>
    %125 = vector.broadcast %82 : vector<1x32xf32> to vector<8x32xf32>
    %126 = arith.addf %124, %125 : vector<8x32xf32>
    %c0_47 = arith.constant 0 : index
    %c0_48 = arith.constant 0 : index
    %127 = vector.load %arg9[%c0_47, %c0_48] : memref<32x32xf32, #tpu.memory_space<vmem>>, vector<32x32xf32>
    %cst_49 = arith.constant dense<0.000000e+00> : vector<8x32xf32>
    %128 = tpu.matmul %126, %127, %cst_49 {dimension_numbers = #tpu.dot_dimension_numbers<[1], [0], [0], [1], [0, 0, 1, 1], [], []>, precision = #tpu.contract_precision<fp32>} : vector<8x32xf32>, vector<32x32xf32>, vector<8x32xf32> -> vector<8x32xf32>
    %129 = vector.broadcast %80 : vector<1x32xf32> to vector<8x32xf32>
    %130 = arith.addf %128, %129 : vector<8x32xf32>
    %cst_50 = arith.constant 0.000000e+00 : f32
    %131 = vector.broadcast %cst_50 : f32 to vector<8x32xf32>
    %132 = arith.maximumf %130, %131 : vector<8x32xf32>
    %133 = arith.addf %126, %132 : vector<8x32xf32>
    %cst_51 = arith.constant dense<0.000000e+00> : vector<8xf32>
    %134 = vector.multi_reduction <add>, %133, %cst_51 [1] : vector<8x32xf32> to vector<8xf32>
    %135 = vector.shape_cast %134 : vector<8xf32> to vector<8x1xf32>
    %cst_52 = arith.constant 3.200000e+01 : f32
    %136 = vector.broadcast %cst_52 : f32 to vector<8x1xf32>
    %137 = arith.divf %135, %136 : vector<8x1xf32>
    %138 = vector.broadcast %137 : vector<8x1xf32> to vector<8x32xf32>
    %139 = arith.subf %133, %138 : vector<8x32xf32>
    %140 = arith.mulf %139, %139 : vector<8x32xf32>
    %cst_53 = arith.constant dense<0.000000e+00> : vector<8xf32>
    %141 = vector.multi_reduction <add>, %140, %cst_53 [1] : vector<8x32xf32> to vector<8xf32>
    %142 = vector.shape_cast %141 : vector<8xf32> to vector<8x1xf32>
    %cst_54 = arith.constant 3.200000e+01 : f32
    %143 = vector.broadcast %cst_54 : f32 to vector<8x1xf32>
    %144 = arith.divf %142, %143 : vector<8x1xf32>
    %145 = vector.broadcast %137 : vector<8x1xf32> to vector<8x32xf32>
    %146 = arith.subf %133, %145 : vector<8x32xf32>
    %cst_55 = arith.constant 9.99999974E-6 : f32
    %147 = vector.broadcast %cst_55 : f32 to vector<8x1xf32>
    %148 = arith.addf %144, %147 : vector<8x1xf32>
    %149 = math.rsqrt %148 : vector<8x1xf32>
    %150 = vector.broadcast %149 : vector<8x1xf32> to vector<8x32xf32>
    %151 = arith.mulf %146, %150 : vector<8x32xf32>
    %152 = vector.broadcast %83 : vector<1x32xf32> to vector<8x32xf32>
    %153 = arith.mulf %151, %152 : vector<8x32xf32>
    %154 = vector.broadcast %84 : vector<1x32xf32> to vector<8x32xf32>
    %155 = arith.addf %153, %154 : vector<8x32xf32>
    %c0_56 = arith.constant 0 : index
    %c0_57 = arith.constant 0 : index
    %156 = vector.load %arg11[%c0_56, %c0_57] : memref<8x32xf32, #tpu.memory_space<vmem>>, vector<8x32xf32>
    tpu.vector_store %arg11[%c0_56, %c0_57], %155 {strides = array<i32>} : memref<8x32xf32, #tpu.memory_space<vmem>>, vector<8x32xf32>,
    return
  }
  func.func @transform_0(%arg0: i32) -> (i32, i32) {
    %c0_i32 = arith.constant 0 : i32
    %c0_i32_0 = arith.constant 0 : i32
    return %arg0, %c0_i32 : i32, i32
  }
  func.func @transform_1(%arg0: i32) -> (i32, i32) {
    %c0_i32 = arith.constant 0 : i32
    %c0_i32_0 = arith.constant 0 : i32
    %c0_i32_1 = arith.constant 0 : i32
    return %c0_i32, %c0_i32_0 : i32, i32
  }
  func.func @transform_2(%arg0: i32) -> (i32, i32) {
    %c0_i32 = arith.constant 0 : i32
    %c0_i32_0 = arith.constant 0 : i32
    %c0_i32_1 = arith.constant 0 : i32
    return %c0_i32, %c0_i32_0 : i32, i32
  }
  func.func @transform_3(%arg0: i32) -> (i32, i32) {
    %c0_i32 = arith.constant 0 : i32
    %c0_i32_0 = arith.constant 0 : i32
    %c0_i32_1 = arith.constant 0 : i32
    return %c0_i32, %c0_i32_0 : i32, i32
  }
  func.func @transform_4(%arg0: i32) -> (i32, i32) {
    %c0_i32 = arith.constant 0 : i32
    %c0_i32_0 = arith.constant 0 : i32
    %c0_i32_1 = arith.constant 0 : i32
    return %c0_i32, %c0_i32_0 : i32, i32
  }
  func.func @transform_5(%arg0: i32) -> (i32, i32) {
    %c0_i32 = arith.constant 0 : i32
    %c0_i32_0 = arith.constant 0 : i32
    %c0_i32_1 = arith.constant 0 : i32
    return %c0_i32, %c0_i32_0 : i32, i32
  }
  func.func @transform_6(%arg0: i32) -> (i32, i32) {
    %c0_i32 = arith.constant 0 : i32
    %c0_i32_0 = arith.constant 0 : i32
    %c0_i32_1 = arith.constant 0 : i32
    return %c0_i32, %c0_i32_0 : i32, i32
  }
  func.func @transform_7(%arg0: i32) -> (i32, i32) {
    %c0_i32 = arith.constant 0 : i32
    %c0_i32_0 = arith.constant 0 : i32
    %c0_i32_1 = arith.constant 0 : i32
    return %c0_i32, %c0_i32_0 : i32, i32
  }
  func.func @transform_8(%arg0: i32) -> (i32, i32) {
    %c0_i32 = arith.constant 0 : i32
    %c0_i32_0 = arith.constant 0 : i32
    %c0_i32_1 = arith.constant 0 : i32
    return %c0_i32, %c0_i32_0 : i32, i32
  }
  func.func @transform_9(%arg0: i32) -> (i32, i32) {
    %c0_i32 = arith.constant 0 : i32
    %c0_i32_0 = arith.constant 0 : i32
    %c0_i32_1 = arith.constant 0 : i32
    return %c0_i32, %c0_i32_0 : i32, i32
  }
  func.func @transform_10(%arg0: i32) -> (i32, i32) {
    %c0_i32 = arith.constant 0 : i32
    %c0_i32_0 = arith.constant 0 : i32
    return %arg0, %c0_i32 : i32, i32
  }
}

</mosaic_0001>

<bundles_post_ra>
// kernel: tpu_custom_call.1
= control target key start
LH: loop header
LB: loop body
LE: loop exit
PB: predicated region body
PF: predicated region fallthrough
CT: control target
= control target key end

     0   :  { %s4016_s0 = inlined_call_operand.hbm [shape: f32[16,32], index: 0, kind: input, shape index: {}]   ;;  %s4017_s1 = inlined_call_operand.hbm [shape: f32[8,32], index: 1, kind: input, shape index: {}]   ;;  %s4018_s2 = inlined_call_operand.hbm [shape: f32[32,128], index: 2, kind: input, shape index: {}]   ;;  %s4019_s3 = inlined_call_operand.hbm [shape: f32[32,160], index: 3, kind: input, shape index: {}]   ;;  %s4020_s4 = inlined_call_operand.hbm [shape: f32[32,32], index: 4, kind: input, shape index: {}]   ;;  %s4021_s5 = inlined_call_operand.hbm [shape: f32[8,32], index: 5, kind: input, shape index: {}]   ;;  %s4022_s6 = inlined_call_operand.hbm [shape: f32[32,128], index: 6, kind: input, shape index: {}]   ;;  %s4023_s7 = inlined_call_operand.hbm [shape: f32[32,160], index: 7, kind: input, shape index: {}]   ;;  %s4024_s8 = inlined_call_operand.hbm [shape: f32[32,32], index: 8, kind: input, shape index: {}]   ;;  %s4025_s9 = inlined_call_operand.vmem [shape: f32[8,32], index: 9, kind: input, shape index: {}]   ;;  %s4026_s10 = inlined_call_operand.hbm [shape: f32[16,32], index: 10, kind: output, shape index: {}]  }
   0x1   :  { %4027 = sst [smem:[#allocation24_spill]] %s4017_s1 }
   0x2   :  { %4028 = sst [smem:[#allocation25_spill]] %s4018_s2 }
   0x3   :  { %4029 = sst [smem:[#allocation26_spill]] %s4019_s3 }
   0x4   :  { %4030 = sst [smem:[#allocation27_spill]] %s4020_s4 }
   0x5   :  { %4031 = sst [smem:[#allocation28_spill]] %s4021_s5 }
   0x6   :  { %15 = vsyncpa [#allocation3], 0 }
   0x7   :  { %17 = vsyncpa [#allocation3 + $0x1], 0 }
   0x8   :  { %18 = vsyncpa [#allocation6], 0 }
   0x9   :  { %19 = vsyncpa [#allocation9], 0 }
   0xa   :  { %20 = vsyncpa [#allocation12], 0 }
   0xb   :  { %21 = vsyncpa [#allocation15], 0 }
   0xc   :  { %22 = vsyncpa [#allocation4], 0 }
   0xd   :  { %24 = vsyncpa [#allocation4 + $0x1], 0  ;;  %s3561_s13 = smov 0   ;;  %s3563_s14 = smov 0  }
   0xe   :  { %s3565_s15 = smov 0   ;;  %s3567_s16 = smov 0  }
   0xf LB: > { %s4032_s1 = sld [smem:[#allocation24_spill]]  ;;  %s3585_s20 = sadd.s32 4294967295, %s3491_s16   ;;  %s3491_s16 = sphi %s3567_s16, %s4048_s16   ;;  %s3487_s15 = sphi %s3565_s15, %s4047_s15   ;;  %s3483_s14 = sphi %s3563_s14, %s4046_s14   ;;  %s3479_s13 = sphi %s3561_s13, %s4045_s13  }
  0x10   : > { %p2961_p0 = scmp.ge.s32.totalorder %s3491_s16, 1  ;;  %p51_p1 = scmp.eq.s32.totalorder %s3585_s20, 0 }
  0x11   : > { %p276_p2 = scmp.lt.s32.totalorder %s3491_s16, 3  ;;  %s3493_s22 = smov [#allocation5]  }
  0x12   : > { %s290_s23 = sshll.u32 %s3493_s22, 4  ;;  %s4034_s3 = sld [smem:[#allocation26_spill]]  ;;  %s291_s23 = int_to_ptr.vmem [resolvable:$true] %s290_s23 }
  0x13   : > { %p3590_p3 = pnand %p2961_p0, %p276_p2  ;;  %s3494_s28 = smov [#allocation8]  }
  0x14   : > { %s315_s29 = sshll.u32 %s3494_s28, 4  ;;  %s3495_s30 = smov 256   ;;  %s316_s29 = int_to_ptr.vmem [resolvable:$true] %s315_s29 }
  0x15   : > { %s288_s19 = sshll.u32 %s4032_s1, 4  ;;  %p3024_p5 = pneg %p3590_p3  ;;  %s289_s19 = int_to_ptr.hbm [resolvable:$true] %s288_s19 }
  0x16   : > { %s3496_s11 = smov 16   ;;  %s4036_s5 = sld [smem:[#allocation28_spill]] }
  0x17   : > { %p3602_p6 = pnand %p3024_p5, %p51_p1  ;;  %s3497_s22 = smov [#allocation11]  }
  0x18   : > { %s313_s26 = sshll.u32 %s4034_s3, 4  ;;  %s344_s24 = sshll.u32 %s3497_s22, 4  ;;  %s314_s26 = int_to_ptr.hbm [resolvable:$true] %s313_s26  ;;  %s345_s24 = int_to_ptr.vmem [resolvable:$true] %s344_s24 }
  0x19   : > { %3027 = dma.hbm_to_vmem [thread:$0]  (!%p3602_p6), %s289_s19, 128, %s291_s23, [#allocation6]  }
  0x1a   : > { %3033 = dma.hbm_to_vmem [thread:$0]  (!%p3602_p6), %s314_s26, 1024, %s316_s29, [#allocation9], %s3495_s30, %s3495_s30, %s3496_s11  }
  0x1b   : > { %s367_s28 = sshll.u32 %s4023_s7, 4  ;;  %s3498_s19 = smov [#allocation14]   ;;  %s368_s28 = int_to_ptr.hbm [resolvable:$true] %s367_s28 }
  0x1c   : > { %s342_s18 = sshll.u32 %s4036_s5, 4  ;;  %s369_s23 = sshll.u32 %s3498_s19, 4  ;;  %s343_s18 = int_to_ptr.hbm [resolvable:$true] %s342_s18  ;;  %s370_s23 = int_to_ptr.vmem [resolvable:$true] %s369_s23 }
  0x1d   : > { %3039 = dma.hbm_to_vmem [thread:$0]  (!%p3602_p6), %s343_s18, 128, %s345_s24, [#allocation12]  }
  0x1e   : > { %s4037_s2 = sld [smem:[#allocation25_spill]]  ;;  %s3499_s12 = smov [#allocation7]  }
  0x1f   : > { %3045 = dma.hbm_to_vmem [thread:$0]  (!%p3602_p6), %s368_s28, 1024, %s370_s23, [#allocation15], %s3495_s30, %s3495_s30, %s3496_s11  }
  0x20   : > { %s301_s17 = sshll.u32 %s3499_s12, 4  ;;  %s4038_s4 = sld [smem:[#allocation27_spill]]  ;;  %s302_s17 = int_to_ptr.vmem [resolvable:$true] %s301_s17 }
  0x21   : > { %s3500_s18 = smov 128   ;;  %s3501_s24 = smov 8  }
  0x22   : > { %s3502_s3 = smov [#allocation10]   ;;  %s353_s30 = sshll.u32 %s4022_s6, 4  ;;  %s354_s30 = int_to_ptr.hbm [resolvable:$true] %s353_s30 }
  0x23   : > { %s329_s19 = sshll.u32 %s3502_s3, 4  ;;  %s381_s23 = sshll.u32 %s4024_s8, 4  ;;  %s330_s19 = int_to_ptr.vmem [resolvable:$true] %s329_s19  ;;  %s382_s23 = int_to_ptr.hbm [resolvable:$true] %s381_s23 }
  0x24   : > { %s299_s29 = sshll.u32 %s4037_s2, 4  ;;  %s3504_s2 = smov [#allocation16]   ;;  %s300_s29 = int_to_ptr.hbm [resolvable:$true] %s299_s29 }
  0x25   : > { %3030 = dma.hbm_to_vmem [thread:$0]  (!%p3602_p6), %s300_s29, 512, %s302_s17, [#allocation6], %s3500_s18, %s3500_s18, %s3501_s24  }
  0x26   : > { %s327_s25 = sshll.u32 %s4038_s4, 4  ;;  %s3503_s29 = smov [#allocation13]   ;;  %s328_s25 = int_to_ptr.hbm [resolvable:$true] %s327_s25 }
  0x27   : > { %3036 = dma.hbm_to_vmem [thread:$0]  (!%p3602_p6), %s328_s25, 512, %s330_s19, [#allocation9], %s3500_s18, %s3500_s18, %s3501_s24  }
  0x28   : > { %s355_s12 = sshll.u32 %s3503_s29, 4  ;;  %s383_s17 = sshll.u32 %s3504_s2, 4  ;;  %s356_s12 = int_to_ptr.vmem [resolvable:$true] %s355_s12  ;;  %s384_s17 = int_to_ptr.vmem [resolvable:$true] %s383_s17 }
  0x29   : > { %3042 = dma.hbm_to_vmem [thread:$0]  (!%p3602_p6), %s354_s30, 512, %s356_s12, [#allocation12], %s3500_s18, %s3500_s18, %s3501_s24  }
  0x2a   : > { %3048 = dma.hbm_to_vmem [thread:$0]  (!%p3602_p6), %s382_s23, 512, %s384_s17, [#allocation15], %s3500_s18, %s3500_s18, %s3501_s24  }
  0x2b   : > { %s2960_s1 = sadd.s32 4294967294, %s3491_s16   ;;  %s3642_s22 = sadd.s32 1, %s3491_s16  }
  0x2c   : > { %s34_s25 = ssub.s32 %s3491_s16, %s3642_s22  ;;  %s37_s3 = sadd.s32 1, %s3487_s15 }
  0x2d   : > { %p35_p7 = scmp.eq.s32.totalorder %s34_s25, 0  ;;  %p44_p8 = scmp.ne.s32.totalorder %s3487_s15, %s3483_s14 }
  0x2e   : > { %p45_p9 = scmp.eq.s32.totalorder %s3491_s16, 0  ;;  %p50_p10 = scmp.ne.s32.totalorder %s3483_s14, %s3479_s13 }
  0x2f   : > { %s3653_s19 = scalar_select %p35_p7, %s3487_s15, %s37_s3  }
  0x30   : > { %p3655_p11 = por %p45_p9, %p44_p8  ;;  %p3661_p12 = por %p51_p1, %p50_p10 }
  0x31   : > { %p263_p13 = scmp.eq.s32.totalorder %s3585_s20, 1  ;;  %p269_p0 = scmp.eq.s32.totalorder %s2960_s1, 1 }
  0x32   : > { %p3065_p2 = scmp.lt.s32.totalorder %s3491_s16, 2  ;;  %s400_s18 = sand.u32 1, %s3487_s15  }
  0x33   : > { %p3668_p5 = por %p263_p13, %p44_p8  ;;  %p3672_p6 = por %p269_p0, %p50_p10 }
  0x34   : > { %s2971_s11 = sshll.u32 %s400_s18, 3  ;;  %s2972_s28 = sshll.u32 %s3491_s16, 3 }
  0x35   : > { %s408_s12 = scalar_lea.hbm %s4016_s0, %s2972_s28  ;;  %s404_s2 = scalar_lea.vmem [#allocation2], %s2971_s11 }
  0x36   : > { %s412_s17 = sshll.u32 %s404_s2, 4  ;;  %s410_s25 = sshll.u32 %s408_s12, 4  ;;  %s413_s17 = int_to_ptr.vmem [resolvable:$true] %s412_s17  ;;  %s411_s25 = int_to_ptr.hbm [resolvable:$true] %s410_s25 }
  0x37   : > { %p3682_p7 = pnand %p3065_p2, %p3655_p11  ;;  %s401_s3 = scalar_lea.sflag [#allocation3], %s400_s18 }
  0x38   : > { %s3379_s4 = sshra.s32 %s411_s25, 4  ;;  %s3386_s23 = scalar_lea.hbm %s4016_s0, 16  ;;  %s3380_s4 = int_to_ptr.hbm [resolvable:$true] %s3379_s4 }
  0x39   : > { %s3381_s5 = scalar_lea.hbm %s3380_s4, 8  ;;  %p3383_p9 = pneg %p3682_p7 }
  0x3a   : > { %p3382_p8 = scmp.ne.s32.totalorder %s3380_s4, %s3381_s5  ;;  %p3387_p11 = scmp.lt.s32.totalorder %s3380_s4, %s4016_s0 }
  0x3b   : > { %p3388_p0 = scmp.lt.s32.totalorder %s3386_s23, %s3381_s5 }
  0x3c   : > { %p3384_p10 = pnand %p3383_p9, %p3382_p8 }
  0x3d   : > { %p3389_p2 = por %p3388_p0, %p3387_p11 }
  0x3e   : > { %p3385_p13 = pneg %p3384_p10 }
  0x40   : > { %p3390_p4 = pnand %p3389_p2, %p3385_p13 }
  0x42   : > { %3393 = shalt.err (!%p3390_p4)
}
  0x43   : > { %3052 = dma.hbm_to_vmem [thread:$0]  (!%p3682_p7), %s411_s25, 128, %s413_s17, %s401_s3  }
  0x44   : > { %421 = sbr.rel (%p3590_p3) target bundleno = 2942 (0xb7e), region = 60  ;;  %s3699_s18 = sand.u32 (!%p3590_p3), 1, %s3483_s14  }
  0x45   : > { %s2974_s12 = sshll.u32 (!%p3590_p3), %s3699_s18, 3  ;;  %s424_s2 = scalar_lea.sflag (!%p3590_p3), [#allocation3], %s3699_s18 }
  0x46   : > { %s3705_s4 = scalar_lea.vmem (!%p3590_p3), [#allocation2], %s2974_s12 }
  0x49   : > { %3454 = dma.done.wait (%p3661_p12), %s424_s2, 128  }
  0x4a   : > { %3456 = vsyncadd (%p3661_p12), %s424_s2, 4294967168 }
  0x4b   : > { %3458 = dma.done.wait (%p51_p1), [#allocation6], 640  }
  0x4c   : > { %3460 = vsyncadd (%p51_p1), [#allocation6], 4294966656 }
  0x4d   : > { %3462 = dma.done.wait (%p51_p1), [#allocation9], 1536  }
  0x4e   : > { %3464 = vsyncadd (%p51_p1), [#allocation9], 4294965760 }
  0x4f   : > { %3466 = dma.done.wait (%p51_p1), [#allocation12], 640  }
  0x50   : > { %3468 = vsyncadd (%p51_p1), [#allocation12], 4294966656 }
  0x51   : > { %3470 = dma.done.wait (%p51_p1), [#allocation15], 1536  }
  0x52   : > { %3472 = vsyncadd (%p51_p1), [#allocation15], 4294965760  ;;  %vm512_vm0 = vcmask 261120   ;;  %v511_v0 = vld [vmem:[#allocation7 + $0x18] sm:$0xff]  ;;  %v510_v1 = vld [vmem:[#allocation7 + $0x10] sm:$0xff]  ;;  %vm1229_vm1 = vcmask 64512  }
  0x53   : > { %v509_v2 = vld [vmem:[#allocation7 + $0x8] sm:$0xff]  ;;  %v3727_v3 = vand.u32 4294901760, %v511_v0  ;;  %v3729_v4 = vand.u32 4294901760, %v510_v1  ;;  %v508_v6 = vld [vmem:[#allocation7] sm:$0xff]  ;;  %v3733_v7 = vld [vmem:[#allocation5] sm:$0xff]  ;;  %s2985_s27 = sshll.u32 %s3585_s20, 3 }
  0x54   : > { %v3731_v5 = vand.u32 4294901760, %v509_v2  ;;  %v707_v8 = vld [vmem:[#allocation8 + $0x30] sm:$0xff]  ;;  %v3735_v9 = vand.u32 4294901760, %v508_v6  ;;  %v514_v10 = vsel %vm512_vm0, %v3733_v7, 0  ;;  %v705_v12 = vld [vmem:[#allocation8 + $0x20] sm:$0xff]  ;;  %v708_v62 = vld [vmem:[#allocation8 + $0x38] sm:$0xff]  ;;  %s2809_s1 = scalar_lea.hbm %s4026_s10, %s2985_s27 }
  0x55   : > { %v3739_v11 = vand.u32 4294901760, %v707_v8  ;;  %v703_v13 = vld [vmem:[#allocation8 + $0x10] sm:$0xff]  ;;  %529 = vmatpush.msra.mxu0 %v3727_v3  ;;  %v558_v14 = vsub.f32 %v511_v0, %v3727_v3  ;;  %629 = vmatpush.msra.mxu3 %v3727_v3  ;;  %v564_v15 = vsub.f32 %v510_v1, %v3729_v4  ;;  %v3748_v17 = vand.u32 4294901760, %v514_v10  ;;  %v701_v37 = vld [vmem:[#allocation8] sm:$0xff]  ;;  %v706_v0 = vld [vmem:[#allocation8 + $0x28] sm:$0xff]  ;;  %s504_s3 = scalar_lea.vmem [#allocation17], %s2974_s12 }
  0x56   : > { %v3746_v16 = vsub.f32 %v509_v2, %v3731_v5  ;;  %v3751_v18 = vsub.f32 %v508_v6, %v3735_v9  ;;  %v3756_v20 = vand.u32 4294901760, %v705_v12  ;;  %v3758_v21 = vand.u32 4294901760, %v703_v13  ;;  %v505_v38 = vld [vmem:[%s3705_s4] sm:$0xff]  ;;  %s2811_s11 = sshll.u32 %s504_s3, 4  ;;  %s2813_s28 = sshll.u32 %s2809_s1, 4  ;;  %s2812_s11 = int_to_ptr.vmem [resolvable:$true] %s2811_s11  ;;  %s2814_s28 = int_to_ptr.hbm [resolvable:$true] %s2813_s28 }
  0x57   : > { %v3754_v19 = vsub.f32 %v707_v8, %v3739_v11  ;;  %600 = vmatpush.msra.mxu2 %v558_v14  ;;  %531 = vmatpush.msra.mxu0 %v3729_v4  ;;  %v559_v22 = vand.u32 4294901760, %v558_v14  ;;  %v565_v23 = vand.u32 4294901760, %v564_v15  ;;  %v537_v24 = vsub.f32 %v514_v10, %v3748_v17  ;;  %v702_v8 = vld [vmem:[#allocation8 + $0x8] sm:$0xff]  ;;  %s2799_s20 = scalar_lea.sflag [#allocation4], %s3699_s18  ;;  %s3423_s23 = sshra.s32 %s2814_s28, 4  ;;  %s3424_s23 = int_to_ptr.hbm [resolvable:$true] %s3423_s23 }
  0x58   : > { %v571_v25 = vand.u32 4294901760, %v3746_v16  ;;  %631 = vmatpush.msra.mxu3 %v3729_v4  ;;  %v577_v27 = vand.u32 4294901760, %v3751_v18  ;;  %v3767_v28 = vsub.f32 %v705_v12, %v3756_v20  ;;  %v3770_v29 = vsub.f32 %v703_v13, %v3758_v21  ;;  %s3425_s29 = scalar_lea.hbm %s3424_s23, 8  ;;  %s3429_s12 = scalar_lea.hbm %s4026_s10, 16 }
  0x59   : > { %v755_v26 = vand.u32 4294901760, %v3754_v19  ;;  %603 = vmatpush.msra.mxu2 %v564_v15  ;;  %533 = vmatpush.msra.mxu0 %v3731_v5  ;;  %v560_v30 = vsub.f32 %v558_v14, %v559_v22  ;;  %v566_v31 = vsub.f32 %v564_v15, %v565_v23  ;;  %v538_v32 = vand.u32 4294901760, %v537_v24  ;;  %p3426_p1 = scmp.ne.s32.totalorder %s3424_s23, %s3425_s29  ;;  %p3430_p12 = scmp.lt.s32.totalorder %s3424_s23, %s4026_s10 }
  0x5a   : > { %v572_v33 = vsub.f32 %v3746_v16, %v571_v25  ;;  %633 = vmatpush.msra.mxu3 %v3731_v5  ;;  %v761_v35 = vand.u32 4294901760, %v3767_v28  ;;  %v767_v36 = vand.u32 4294901760, %v3770_v29  ;;  %v578_v42 = vsub.f32 %v3751_v18, %v577_v27  ;;  %p3431_p7 = scmp.lt.s32.totalorder %s3429_s12, %s3425_s29 }
  0x5b   : > { %v756_v34 = vsub.f32 %v3754_v19, %v755_v26  ;;  %v561_v39 = vand.u32 4294901760, %v560_v30  ;;  %606 = vmatpush.msra.mxu2 %v3746_v16  ;;  %535 = vmatpush.msra.mxu0 %v3735_v9  ;;  %v567_v40 = vand.u32 4294901760, %v566_v31  ;;  %v539_v41 = vsub.f32 %v537_v24, %v538_v32  ;;  %p3427_p3 = pnand %p3426_p1, %p3668_p5 }
  0x5c   : > { %635 = vmatpush.msra.mxu3 %v3735_v9  ;;  %v573_v43 = vand.u32 4294901760, %v572_v33  ;;  %v762_v45 = vsub.f32 %v3767_v28, %v761_v35  ;;  %v768_v47 = vsub.f32 %v3770_v29, %v767_v36  ;;  %v730_v48 = vand.u32 4294901760, %v701_v37  ;;  %p3432_p8 = por %p3431_p7, %p3430_p12 }
  0x5d   : > { %658 = vmatpush.msrb.mxu0 %v559_v22  ;;  %v757_v44 = vand.u32 4294901760, %v756_v34  ;;  %562 = vmatpush.msra.mxu1 %v561_v39  ;;  %v540_v46 = vand.u32 4294901760, %v539_v41  ;;  %v710_v49 = vsel %vm512_vm0, %v505_v38, 0  ;;  %v579_v52 = vand.u32 4294901760, %v578_v42  ;;  %p3428_p4 = pneg %p3427_p3 }
  0x5e   : > { %609 = vmatpush.msra.mxu2 %v3751_v18  ;;  %639 = vmatmul.f32.vlgmr.msra.gmra.mxu3 %v538_v32  ;;  %v763_v50 = vand.u32 4294901760, %v762_v45  ;;  %v3791_v51 = vand.u32 4294901760, %v710_v49  ;;  %v772_v53 = vsub.f32 %v701_v37, %v730_v48  ;;  %v769_v55 = vand.u32 4294901760, %v768_v47 }
  0x5f   : > { %612 = vmatmul.f32.vlgmr.msra.gmra.mxu2 %v537_v24  ;;  %568 = vmatpush.msra.mxu1 %v567_v40  ;;  %v909_v63 = vand.u32 4294901760, %v708_v62  ;;  %v911_v2 = vand.u32 4294901760, %v706_v0  ;;  %v915_v12 = vand.u32 4294901760, %v702_v8  ;;  %p3433_p9 = pnand %p3432_p8, %p3428_p4 }
  0x60   : > { %541 = vmatmul.f32.vlgmr.msra.gmra.mxu0 %v540_v46  ;;  %725 = vmatpush.msrb.mxu2 %v3739_v11  ;;  %v3795_v54 = vsub.f32 %v710_v49, %v3791_v51  ;;  %v773_v56 = vand.u32 4294901760, %v772_v53 }
  0x61   : > { %758 = vmatpush.msrb.mxu3 %v757_v44  ;;  %574 = vmatpush.msra.mxu1 %v573_v43  ;;  %v939_v1 = vsub.f32 %v708_v62, %v909_v63  ;;  %v957_v16 = vsub.f32 %v702_v8, %v915_v12 }
  0x62   : > { %662 = vmatpush.msrb.mxu0 %v565_v23  ;;  %727 = vmatpush.msrb.mxu2 %v3756_v20  ;;  %v3799_v57 = vand.u32 4294901760, %v3795_v54  ;;  %v774_v58 = vsub.f32 %v772_v53, %v773_v56 }
  0x63   : > { %764 = vmatpush.msrb.mxu3 %v763_v50  ;;  %580 = vmatpush.msra.mxu1 %v579_v52 }
  0x64   : > { %666 = vmatpush.msrb.mxu0 %v571_v25  ;;  %582 = vmatmul.f32.vlgmr.msra.gmra.mxu1 %v3748_v17  ;;  %v735_v59 = vsub.f32 %v3795_v54, %v3799_v57  ;;  %v775_v60 = vand.u32 4294901760, %v774_v58 }
  0x65   : > { %729 = vmatpush.msrb.mxu2 %v3758_v21  ;;  %689 = vmatpush.msrb.mxu1 %v3727_v3  ;;  %v704_v3 = vld [vmem:[#allocation8 + $0x18] sm:$0xff] }
  0x66   : > { %770 = vmatpush.msrb.mxu3 %v769_v55  ;;  %670 = vmatpush.msrb.mxu0 %v577_v27  ;;  %v3806_v61 = vand.u32 4294901760, %v735_v59  ;;  %v913_v6 = vand.u32 4294901760, %v704_v3 }
  0x67   : > { %731 = vmatpush.msrb.mxu2 %v730_v48  ;;  %691 = vmatpush.msrb.mxu1 %v3729_v4  ;;  %v940_v4 = vand.u32 4294901760, %v939_v1 }
  0x68   : > { %776 = vmatpush.msrb.mxu3 %v775_v60  ;;  %672 = vmatmul.f32.vlgmr.msrb.gmra.mxu0 %v3748_v17 }
  0x69   : > { %737 = vmatmul.f32.vlgmr.msrb.gmra.mxu2 %v3806_v61  ;;  %778 = vmatmul.f32.vlgmr.msrb.gmra.mxu3 %v3791_v51 }
  0x6a   : > { %693 = vmatpush.msrb.mxu1 %v3731_v5  ;;  %796 = vmatpush.msra.mxu0 %v3754_v19  ;;  %v945_v5 = vsub.f32 %v706_v0, %v911_v2  ;;  %v958_v19 = vand.u32 4294901760, %v957_v16 }
  0x6b   : > { %854 = vmatpush.msra.mxu2 %v755_v26  ;;  %885 = vmatpush.msra.mxu3 %v3739_v11 }
  0x6c   : > { %695 = vmatpush.msrb.mxu1 %v3735_v9  ;;  %799 = vmatpush.msra.mxu0 %v3767_v28  ;;  %v941_v9 = vsub.f32 %v939_v1, %v940_v4  ;;  %v946_v10 = vand.u32 4294901760, %v945_v5 }
  0x6d   : > { %858 = vmatpush.msra.mxu2 %v761_v35  ;;  %697 = vmatmul.f32.vlgmr.msrb.gmra.mxu1 %v3748_v17 }
  0x6e   : > { %887 = vmatpush.msra.mxu3 %v3756_v20  ;;  %802 = vmatpush.msra.mxu0 %v3770_v29  ;;  %v942_v13 = vand.u32 4294901760, %v941_v9  ;;  %v947_v14 = vsub.f32 %v945_v5, %v946_v10 }
  0x6f   : > { %825 = vmatpush.msra.mxu1 %v3739_v11  ;;  %862 = vmatpush.msra.mxu2 %v767_v36  ;;  %v951_v11 = vsub.f32 %v704_v3, %v913_v6 }
  0x70   : > { %889 = vmatpush.msra.mxu3 %v3758_v21  ;;  %805 = vmatpush.msra.mxu0 %v772_v53  ;;  %v948_v17 = vand.u32 4294901760, %v947_v14 }
  0x71   : > { %827 = vmatpush.msra.mxu1 %v3756_v20  ;;  %866 = vmatpush.msra.mxu2 %v773_v56  ;;  %v952_v15 = vand.u32 4294901760, %v951_v11 }
  0x72   : > { %808 = vmatmul.f32.vlgmr.msra.gmra.mxu0 %v3795_v54  ;;  %868 = vmatmul.f32.vlgmr.msra.gmra.mxu2 %v3791_v51 }
  0x73   : > { %829 = vmatpush.msra.mxu1 %v3758_v21  ;;  %891 = vmatpush.msra.mxu3 %v730_v48  ;;  %v953_v18 = vsub.f32 %v951_v11, %v952_v15  ;;  %v959_v21 = vsub.f32 %v957_v16, %v958_v19 }
  0x74   : > { %893 = vmatmul.f32.vlgmr.msra.gmra.mxu3 %v3791_v51  ;;  %910 = vmatpush.msrb.mxu0 %v909_v63 }
  0x75   : > { %831 = vmatpush.msra.mxu1 %v730_v48  ;;  %1010 = vmatpush.msrb.mxu3 %v909_v63  ;;  %v954_v20 = vand.u32 4294901760, %v953_v18  ;;  %v960_v22 = vand.u32 4294901760, %v959_v21 }
  0x76   : > { %835 = vmatmul.f32.vlgmr.msra.gmra.mxu1 %v3799_v57  ;;  %981 = vmatpush.msrb.mxu2 %v939_v1 }
  0x77   : > { %912 = vmatpush.msrb.mxu0 %v911_v2  ;;  %1012 = vmatpush.msrb.mxu3 %v911_v2 }
  0x78   : > { %984 = vmatpush.msrb.mxu2 %v945_v5  ;;  %943 = vmatpush.msrb.mxu1 %v942_v13 }
  0x79   : > { %914 = vmatpush.msrb.mxu0 %v913_v6  ;;  %1014 = vmatpush.msrb.mxu3 %v913_v6 }
  0x7a   : > { %987 = vmatpush.msrb.mxu2 %v951_v11  ;;  %949 = vmatpush.msrb.mxu1 %v948_v17 }
  0x7b   : > { %916 = vmatpush.msrb.mxu0 %v915_v12  ;;  %1016 = vmatpush.msrb.mxu3 %v915_v12 }
  0x7c   : > { %922 = vmatmul.f32.vlgmr.msrb.gmra.mxu0 %v3806_v61  ;;  %990 = vmatpush.msrb.mxu2 %v957_v16 }
  0x7d   : > { %993 = vmatmul.f32.vlgmr.msrb.gmra.mxu2 %v3795_v54  ;;  %1039 = vmatpush.msra.mxu0 %v940_v4 }
  0x7e   : > { %1020 = vmatmul.f32.vlgmr.msrb.gmra.mxu3 %v3799_v57  ;;  %955 = vmatpush.msrb.mxu1 %v954_v20 }
  0x7f   : > { %1043 = vmatpush.msra.mxu0 %v946_v10 }
  0x80   : > { %961 = vmatpush.msrb.mxu1 %v960_v22 }
  0x81   : > { %1047 = vmatpush.msra.mxu0 %v952_v15  ;;  %963 = vmatmul.f32.vlgmr.msrb.gmra.mxu1 %v3791_v51 }
  0x82   : > { %1070 = vmatpush.msra.mxu1 %v909_v63 }
  0x83   : > { %1051 = vmatpush.msra.mxu0 %v958_v19 }
  0x84   : > { %1053 = vmatmul.f32.vlgmr.msra.gmra.mxu0 %v3791_v51  ;;  %1072 = vmatpush.msra.mxu1 %v911_v2 }
  0x86   : > { %1074 = vmatpush.msra.mxu1 %v913_v6 }
  0x88   : > { %1076 = vmatpush.msra.mxu1 %v915_v12 }
  0x89   : > { %1078 = vmatmul.f32.vlgmr.msra.gmra.mxu1 %v3791_v51 }
  0xdd   : > { %v542_v23 = vpop.f32.mrf.mxu0 }
  0xe1   : > { %v583_v24 = vpop.f32.mrf.mxu1  ;;  %v640_v27 = vpop.f32.mrf.mxu3 }
  0xe2   : > { %v613_v25 = vpop.f32.mrf.mxu2  ;;  %v584_v26 = vadd.f32 %v583_v24, %v542_v23 }
  0xe4   : > { %v614_v28 = vadd.f32 %v613_v25, %v584_v26 }
  0xe5   : > { %v673_v29 = vpop.f32.mrf.mxu0 }
  0xe6   : > { %v641_v30 = vadd.f32 %v640_v27, %v614_v28 }
  0xe8   : > { %v674_v31 = vadd.f32 %v673_v29, %v641_v30 }
  0xea   : > { %v698_v32 = vpop.f32.mrf.mxu1 }
  0xeb   : > { %v699_v33 = vadd.f32 %v698_v32, %v674_v31 }
  0xec   : > { %v738_v34 = vpop.f32.mrf.mxu2  ;;  %v779_v35 = vpop.f32.mrf.mxu3 }
  0xed   : > { %v1099_v36 = vand.u32 4294901760, %v699_v33  ;;  %v780_v37 = vadd.f32 %v779_v35, %v738_v34 }
  0xef   : > { %v809_v38 = vpop.f32.mrf.mxu0  ;;  %v1100_v39 = vsub.f32 %v699_v33, %v1099_v36 }
  0xf0   : > { %v810_v40 = vadd.f32 %v809_v38, %v780_v37 }
  0xf1   : > { %v1101_v43 = vand.u32 4294901760, %v1100_v39 }
  0xf3   : > { %v836_v41 = vpop.f32.mrf.mxu1  ;;  %v1102_v48 = vsub.f32 %v1100_v39, %v1101_v43 }
  0xf4   : > { %v837_v42 = vadd.f32 %v836_v41, %v810_v40 }
  0xf5   : > { %v869_v44 = vpop.f32.mrf.mxu2  ;;  %v1103_v52 = vand.u32 4294901760, %v1102_v48 }
  0xf6   : > { %v870_v45 = vadd.f32 %v869_v44, %v837_v42 }
  0xf7   : > { %v894_v46 = vpop.f32.mrf.mxu3 }
  0xf8   : > { %v895_v47 = vadd.f32 %v894_v46, %v870_v45 }
  0xf9   : > { %v923_v58 = vpop.f32.mrf.mxu0 }
  0xfa   : > { %v1097_v49 = vand.u32 4294901760, %v895_v47 }
  0xfc   : > { %v1124_v50 = vsub.f32 %v895_v47, %v1097_v49  ;;  %1098 = vmatpush.xpose.msra.mxu2 %v1097_v49  ;;  %1174 = vmatpush.xpose.msrb.mxu1 %v1097_v49 }
  0xfe   : > { %v1125_v53 = vand.u32 4294901760, %v1124_v50  ;;  %1151 = vmatpush.xpose.msrb.mxu0 %v1124_v50  ;;  %v964_v59 = vpop.f32.mrf.mxu1 }
  0xff   : > { %1104 = vmatmul.f32.vlgmr.msra.gmra.mxu2 %v1103_v52  ;;  %1178 = vmatmul.f32.vlgmr.msrb.gmra.mxu1 %v1101_v43  ;;  %v965_v62 = vadd.f32 %v964_v59, %v923_v58 }
 0x100   : > { %v1126_v55 = vsub.f32 %v1124_v50, %v1125_v53  ;;  %1200 = vmatpush.xpose.msrb.mxu2 %v1125_v53  ;;  %v994_v60 = vpop.f32.mrf.mxu2 }
 0x101   : > { %1154 = vmatmul.f32.vlgmr.msrb.gmra.mxu0 %v1100_v39  ;;  %v1021_v63 = vpop.f32.mrf.mxu3  ;;  %v995_v0 = vadd.f32 %v994_v60, %v965_v62  ;;  %v1054_v2 = vpop.f32.mrf.mxu0 }
 0x102   : > { %v1127_v56 = vand.u32 4294901760, %v1126_v55 }
 0x103   : > { %v1022_v1 = vadd.f32 %v1021_v63, %v995_v0 }
 0x104   : > { %1128 = vmatpush.xpose.msra.mxu3 %v1127_v56 }
 0x105   : > { %v1055_v3 = vadd.f32 %v1054_v2, %v1022_v1  ;;  %v3505_v1 = vmov 32.0  }
 0x106   : > { %v1079_v4 = vpop.f32.mrf.mxu1 }
 0x107   : > { %1130 = vmatmul.f32.vlgmr.msra.gmra.mxu3 %v1099_v36  ;;  %1202 = vmatmul.f32.vlgmr.msrb.gmra.mxu2 %v1099_v36  ;;  %v1080_v5 = vadd.f32 %v1079_v4, %v1055_v3 }
 0x108   : > { %1222 = vmatpush.xpose.msrb.mxu3 %v1097_v49 }
 0x109   : > { %v1272_v6 = vand.u32 4294901760, %v1080_v5 }
 0x10b   : > { %v1299_v8 = vsub.f32 %v1080_v5, %v1272_v6  ;;  %1273 = vmatpush.msra.mxu0 %v1272_v6 }
 0x10c   : > { %1349 = vmatpush.msra.mxu3 %v1272_v6 }
 0x10d   : > { %1326 = vmatpush.msra.mxu2 %v1299_v8  ;;  %v1300_v9 = vand.u32 4294901760, %v1299_v8 }
 0x10f   : > { %1224 = vmatmul.f32.vlgmr.msrb.gmra.mxu3 %v1099_v36  ;;  %v1301_v10 = vsub.f32 %v1299_v8, %v1300_v9  ;;  %1375 = vmatpush.msrb.mxu0 %v1300_v9 }
 0x111   : > { %v1302_v11 = vand.u32 4294901760, %v1301_v10 }
 0x113   : > { %1303 = vmatpush.msra.mxu1 %v1302_v11 }
 0x115   : > { %1397 = vmatpush.msrb.mxu1 %v1272_v6 }
 0x17c   : > { %v1179_v17 = vpop.f32.mrf.mxu1 }
 0x17e   : > { %v1155_v15 = vpop.f32.mrf.mxu0 }
 0x182   : > { %v1105_v12 = vpop.f32.mrf.mxu2 }
 0x18a   : > { %v1131_v13 = vpop.f32.mrf.mxu3  ;;  %v1203_v19 = vpop.f32.mrf.mxu2 }
 0x18b   : > { %v1132_v14 = vadd.f32 %v1131_v13, %v1105_v12  ;;  %v1440_v13 = vld [vmem:[#allocation10 + $0x18] sm:$0xff] }
 0x18d   : > { %v1156_v16 = vadd.f32 %v1155_v15, %v1132_v14  ;;  %v1457_v14 = vand.u32 4294901760, %v1440_v13  ;;  %v1439_v15 = vld [vmem:[#allocation10 + $0x10] sm:$0xff] }
 0x18f   : > { %v1180_v18 = vadd.f32 %v1179_v17, %v1156_v16  ;;  %v1487_v16 = vsub.f32 %v1440_v13, %v1457_v14  ;;  %v1459_v17 = vand.u32 4294901760, %v1439_v15  ;;  %1458 = vmatpush.msrb.mxu2 %v1457_v14 }
 0x191   : > { %v1204_v20 = vadd.f32 %v1203_v19, %v1180_v18  ;;  %v1438_v18 = vld [vmem:[#allocation10 + $0x8] sm:$0xff]  ;;  %v1488_v19 = vand.u32 4294901760, %v1487_v16  ;;  %1460 = vmatpush.msrb.mxu2 %v1459_v17 }
 0x192   : > { %v1225_v21 = vpop.f32.mrf.mxu3 }
 0x193   : > { %v1226_v22 = vadd.f32 %v1225_v21, %v1204_v20  ;;  %v1493_v20 = vsub.f32 %v1439_v15, %v1459_v17  ;;  %v1461_v21 = vand.u32 4294901760, %v1438_v18 }
 0x195   : > { %v1228_v23 = vmul.f32 0.25, %v1226_v22  ;;  %v1437_v22 = vld [vmem:[#allocation10] sm:$0xff]  ;;  %1462 = vmatpush.msrb.mxu2 %v1461_v21 }
 0x197   : > { %v1230_v24 = vsel %vm1229_vm1, %v1228_v23, -inf }
 0x198   : > { %1231 = vmax.xlane.f32.xlu0 %v1230_v24  ;;  %v1494_v24 = vand.u32 4294901760, %v1493_v20 }
 0x20b   : > { %v1232_v25 = vpop.xlane.xlu0 %1231 }
 0x20c   : > { %v1233_v26 = vsub.f32 %v1228_v23, %v1232_v25  ;;  %v1489_v23 = vsub.f32 %v1487_v16, %v1488_v19  ;;  %v1499_v25 = vsub.f32 %v1438_v18, %v1461_v21 }
 0x20e   : > { %v1234_v27 = vmul.f32 1.442695, %v1233_v26  ;;  %v1463_v26 = vand.u32 4294901760, %v1437_v22 }
 0x210   : > { %3120 = vpow2.f32 %v1234_v27  ;;  %v1490_v27 = vand.u32 4294901760, %v1489_v23  ;;  %1464 = vmatpush.msrb.mxu2 %v1463_v26  ;;  %v1661_v23 = vld [vmem:[#allocation13 + $0x10] sm:$0xff] }
 0x212   : > { %1491 = vmatpush.msrb.mxu3 %v1490_v27 }
 0x216   : > { %v3121_v28 = vpop.eup %3120 }
 0x217   : > { %v1236_v29 = vsel %vm1229_vm1, %v3121_v28, 0.0 }
 0x218   : > { %1237 = vadd.xlane.f32.xlu0 %v1236_v29  ;;  %v1500_v29 = vand.u32 4294901760, %v1499_v25 }
 0x28b   : > { %v1238_v30 = vpop.xlane.xlu0 %1237 }
 0x28c   : > { %3122 = vrcp.f32 %v1238_v30  ;;  %v1250_v34 = vand.u32 2147483648, %v1238_v30  ;;  %v1248_v36 = vand.u32 2147483647, %v1238_v30  ;;  %vm1244_vm3 = vweird.f32 %v1238_v30 }
 0x28d   : > { %3124 = vrcp.f32 %v3505_v1 }
 0x28e   : > { %v1251_v38 = vor.u32 1.1754944e-38, %v1250_v34  ;;  %vm1249_vm5 = vcmp.eq.f32.partialorder %v1248_v36, 8.507059e+37 }
 0x292   : > { %v3123_v31 = vpop.eup %3122 }
 0x293   : > { %v1240_v32 = vmul.f32 %v3123_v31, %v1238_v30  ;;  %vm1245_vm2 = vweird.f32 %v3123_v31  ;;  %v3125_v2 = vpop.eup %3124  ;;  %v1505_v30 = vsub.f32 %v1437_v22, %v1463_v26 }
 0x294   : > { %vm1246_vm4 = vmor %vm1244_vm3, %vm1245_vm2  ;;  %v1408_v3 = vmul.f32 32.0, %v3125_v2  ;;  %vm1412_vm6 = vweird.f32 %v3125_v2 }
 0x295   : > { %v1241_v33 = vsub.f32 1.0, %v1240_v32  ;;  %v1501_v32 = vsub.f32 %v1499_v25, %v1500_v29 }
 0x296   : > { %v1409_v4 = vsub.f32 1.0, %v1408_v3 }
 0x297   : > { %v1242_v35 = vmul.f32 %v3123_v31, %v1241_v33  ;;  %v1506_v33 = vand.u32 4294901760, %v1505_v30  ;;  %v1502_v34 = vand.u32 4294901760, %v1501_v32 }
 0x298   : > { %v1410_v5 = vmul.f32 %v3125_v2, %v1409_v4 }
 0x299   : > { %v1243_v37 = vadd.f32 %v3123_v31, %v1242_v35  ;;  %v1507_v35 = vsub.f32 %v1505_v30, %v1506_v33 }
 0x29a   : > { %v1411_v6 = vadd.f32 %v3125_v2, %v1410_v5 }
 0x29b   : > { %v1247_v39 = vsel %vm1246_vm4, %v3123_v31, %v1243_v37  ;;  %v1508_v36 = vand.u32 4294901760, %v1507_v35 }
 0x29c   : > { %v1252_v40 = vsel %vm1249_vm5, %v1251_v38, %v1247_v39  ;;  %v3843_v8 = vsel %vm1412_vm6, %v3125_v2, %v1411_v6 }
 0x29d   : > { %v1253_v41 = vmul.f32 %v3121_v28, %v1252_v40  ;;  %v1495_v28 = vsub.f32 %v1493_v20, %v1494_v24 }
 0x29f   : > { %v1255_v42 = vsel %vm1229_vm1, %v1253_v41, 0  ;;  %v1496_v31 = vand.u32 4294901760, %v1495_v28 }
 0x2a0   : > { %v1274_v43 = vand.u32 4294901760, %v1255_v42 }
 0x2a1   : > { %1497 = vmatpush.msrb.mxu3 %v1496_v31 }
 0x2a2   : > { %1305 = vmatmul.f32.vlgmr.msra.gmra.mxu1 %v1274_v43  ;;  %v1275_v44 = vsub.f32 %v1255_v42, %v1274_v43 }
 0x2a3   : > { %1558 = vmatpush.msra.mxu1 %v1457_v14  ;;  %1503 = vmatpush.msrb.mxu3 %v1502_v34 }
 0x2a4   : > { %1329 = vmatmul.f32.vlgmr.msra.gmra.mxu2 %v1275_v44  ;;  %v1276_v45 = vand.u32 4294901760, %v1275_v44 }
 0x2a5   : > { %1560 = vmatpush.msra.mxu1 %v1459_v17  ;;  %1587 = vmatpush.msra.mxu2 %v1488_v19 }
 0x2a6   : > { %1353 = vmatmul.f32.vlgmr.msra.gmra.mxu3 %v1276_v45  ;;  %v1277_v46 = vsub.f32 %v1275_v44, %v1276_v45  ;;  %v3852_v44 = vld [vmem:[#allocation11] sm:$0xff] }
 0x2a7   : > { %1562 = vmatpush.msra.mxu1 %v1461_v21  ;;  %1591 = vmatpush.msra.mxu2 %v1494_v24 }
 0x2a8   : > { %v1278_v47 = vand.u32 4294901760, %v1277_v46  ;;  %1509 = vmatpush.msrb.mxu3 %v1508_v36 }
 0x2a9   : > { %1564 = vmatpush.msra.mxu1 %v1463_v26  ;;  %1595 = vmatpush.msra.mxu2 %v1500_v29 }
 0x2aa   : > { %1279 = vmatmul.f32.vlgmr.msra.gmra.mxu0 %v1278_v47  ;;  %1399 = vmatmul.f32.vlgmr.msrb.gmra.mxu1 %v1274_v43  ;;  %v1433_v47 = vperm.slane %v3852_v44, 1 }
 0x2ab   : > { %1529 = vmatpush.msra.mxu0 %v1487_v16  ;;  %1618 = vmatpush.msra.mxu3 %v1457_v14 }
 0x2ac   : > { %1599 = vmatpush.msra.mxu2 %v1506_v33 }
 0x2ad   : > { %1532 = vmatpush.msra.mxu0 %v1493_v20  ;;  %1620 = vmatpush.msra.mxu3 %v1459_v17 }
 0x2af   : > { %1535 = vmatpush.msra.mxu0 %v1499_v25  ;;  %1622 = vmatpush.msra.mxu3 %v1461_v21  ;;  %v1662_v21 = vld [vmem:[#allocation13 + $0x18] sm:$0xff]  ;;  %v1677_v25 = vand.u32 4294901760, %v1661_v23 }
 0x2b0   : > { %v1675_v22 = vand.u32 4294901760, %v1662_v21 }
 0x2b1   : > { %1538 = vmatpush.msra.mxu0 %v1505_v30  ;;  %1624 = vmatpush.msra.mxu3 %v1463_v26  ;;  %v1660_v26 = vld [vmem:[#allocation13 + $0x8] sm:$0xff]  ;;  %v1711_v29 = vsub.f32 %v1661_v23, %v1677_v25  ;;  %v1659_v30 = vld [vmem:[#allocation13] sm:$0xff] }
 0x2b2   : > { %1377 = vmatmul.f32.vlgmr.msrb.gmra.mxu0 %v1274_v43  ;;  %v1705_v24 = vsub.f32 %v1662_v21, %v1675_v22  ;;  %v3866_v28 = vand.u32 4294901760, %v1660_v26  ;;  %v3869_v33 = vand.u32 4294901760, %v1659_v30 }
 0x2b3   : > { %1676 = vmatpush.msrb.mxu0 %v1675_v22  ;;  %v1712_v32 = vand.u32 4294901760, %v1711_v29 }
 0x2b4   : > { %v1706_v27 = vand.u32 4294901760, %v1705_v24  ;;  %v1717_v34 = vsub.f32 %v1660_v26, %v3866_v28 }
 0x2b5   : > { %1678 = vmatpush.msrb.mxu0 %v1677_v25  ;;  %v1713_v36 = vsub.f32 %v1711_v29, %v1712_v32 }
 0x2b6   : > { %v1707_v31 = vsub.f32 %v1705_v24, %v1706_v27 }
 0x2b7   : > { %1680 = vmatpush.msrb.mxu0 %v3866_v28 }
 0x2b8   : > { %v1708_v35 = vand.u32 4294901760, %v1707_v31 }
 0x2b9   : > { %1682 = vmatpush.msrb.mxu0 %v3869_v33 }
 0x2ba   : > { %1709 = vmatpush.msrb.mxu1 %v1708_v35 }
 0x31f   : > { %v1306_v48 = vpop.f32.mrf.mxu1 }
 0x327   : > { %v1280_v49 = vpop.f32.mrf.mxu0  ;;  %v1330_v52 = vpop.f32.mrf.mxu2 }
 0x328   : > { %v1307_v50 = vadd.f32 %v1306_v48, %v1280_v49  ;;  %v1400_v60 = vpop.f32.mrf.mxu1 }
 0x329   : > { %v1354_v55 = vpop.f32.mrf.mxu3 }
 0x32a   : > { %v1331_v53 = vadd.f32 %v1330_v52, %v1307_v50  ;;  %v1435_v50 = vperm.slane %v3852_v44, 2 }
 0x32c   : > { %v1355_v56 = vadd.f32 %v1354_v55, %v1331_v53 }
 0x32f   : > { %v1378_v58 = vpop.f32.mrf.mxu0 }
 0x330   : > { %v1379_v59 = vadd.f32 %v1378_v58, %v1355_v56 }
 0x332   : > { %v1401_v62 = vadd.f32 %v1400_v60, %v1379_v59 }
 0x334   : > { %v1403_v63 = vadd.f32 %v1401_v62, %v3733_v7 }
 0x336   : > { %v1404_v0 = vsel %vm512_vm0, %v1403_v63, 0.0 }
 0x337   : > { %1405 = vadd.xlane.f32.xlu1 %v1404_v0 }
 0x3aa   : > { %v1406_v9 = vpop.xlane.xlu1 %1405 }
 0x3ab   : > { %v1414_v10 = vmul.f32 %v3843_v8, %v1406_v9 }
 0x3ad   : > { %v3846_v11 = vsub.f32 %v1403_v63, %v1414_v10  ;;  %v1441_v63 = vperm.slane %v3852_v44, 0 }
 0x3af   : > { %v1416_v7 = vmul.f32 %v3846_v11, %v3846_v11 }
 0x3b1   : > { %v1417_v12 = vsel %vm512_vm0, %v1416_v7, 0.0 }
 0x3b2   : > { %1418 = vadd.xlane.f32.xlu1 %v1417_v12 }
 0x425   : > { %v1419_v37 = vpop.xlane.xlu1 %1418 }
 0x426   : > { %v1420_v38 = vmul.f32 %v1419_v37, %v3843_v8  ;;  %v1718_v37 = vand.u32 4294901760, %v1717_v34 }
 0x428   : > { %v1421_v39 = vadd.f32 1e-05, %v1420_v38  ;;  %v1723_v38 = vsub.f32 %v1659_v30, %v3869_v33 }
 0x42a   : > { %3126 = vrsqrt.f32 %v1421_v39  ;;  %vm1428_vm8 = vweird.f32 %v1421_v39 }
 0x430   : > { %v3127_v40 = vpop.eup %3126 }
 0x431   : > { %v1423_v41 = vmul.f32 %v3127_v40, %v1421_v39  ;;  %vm1429_vm7 = vweird.f32 %v3127_v40  ;;  %v1714_v39 = vand.u32 4294901760, %v1713_v36 }
 0x432   : > { %vm1430_vm9 = vmor %vm1428_vm8, %vm1429_vm7 }
 0x433   : > { %v1424_v42 = vmul.f32 %v3127_v40, %v1423_v41  ;;  %v1724_v41 = vand.u32 4294901760, %v1723_v38  ;;  %1715 = vmatpush.msrb.mxu1 %v1714_v39 }
 0x435   : > { %v1425_v43 = vmul.f32 0.5, %v1424_v42  ;;  %v1854_v42 = vld [vmem:[#allocation14 + $0x30] sm:$0xff] }
 0x437   : > { %v1426_v45 = vsub.f32 1.5, %v1425_v43 }
 0x439   : > { %v1427_v46 = vmul.f32 %v3127_v40, %v1426_v45  ;;  %v1725_v45 = vsub.f32 %v1723_v38, %v1724_v41 }
 0x43b   : > { %v1431_v48 = vsel %vm1430_vm9, %v3127_v40, %v1427_v46  ;;  %v1719_v40 = vsub.f32 %v1717_v34, %v1718_v37  ;;  %v3878_v46 = vand.u32 4294901760, %v1854_v42 }
 0x43c   : > { %v1432_v49 = vmul.f32 %v1431_v48, %v3846_v11 }
 0x43d   : > { %v1720_v43 = vand.u32 4294901760, %v1719_v40  ;;  %v1901_v48 = vsub.f32 %v1854_v42, %v3878_v46 }
 0x43e   : > { %v1434_v52 = vmul.f32 %v1433_v47, %v1432_v49  ;;  %v1726_v47 = vand.u32 4294901760, %v1725_v45 }
 0x43f   : > { %1721 = vmatpush.msrb.mxu1 %v1720_v43  ;;  %v1656_v43 = vperm.slane %v3852_v44, 4 }
 0x440   : > { %v1436_v53 = vadd.f32 %v1435_v50, %v1434_v52  ;;  %v1850_v50 = vld [vmem:[#allocation14 + $0x10] sm:$0xff] }
 0x441   : > { %1727 = vmatpush.msrb.mxu1 %v1726_v47 }
 0x442   : > { %v1443_v55 = vsel %vm512_vm0, %v1436_v53, 0 }
 0x443   : > { %v1465_v56 = vand.u32 4294901760, %v1443_v55 }
 0x445   : > { %1511 = vmatmul.f32.vlgmr.msrb.gmra.mxu3 %v1465_v56  ;;  %v1466_v58 = vsub.f32 %v1443_v55, %v1465_v56 }
 0x446   : > { %1776 = vmatpush.msrb.mxu3 %v1675_v22 }
 0x447   : > { %1541 = vmatmul.f32.vlgmr.msra.gmra.mxu0 %v1466_v58  ;;  %v1467_v59 = vand.u32 4294901760, %v1466_v58 }
 0x448   : > { %1778 = vmatpush.msrb.mxu3 %v1677_v25  ;;  %1805 = vmatpush.msra.mxu0 %v1706_v27 }
 0x449   : > { %1568 = vmatmul.f32.vlgmr.msra.gmra.mxu1 %v1467_v59  ;;  %v1468_v60 = vsub.f32 %v1466_v58, %v1467_v59 }
 0x44a   : > { %1780 = vmatpush.msrb.mxu3 %v3866_v28  ;;  %1809 = vmatpush.msra.mxu0 %v1712_v32 }
 0x44b   : > { %v1469_v62 = vand.u32 4294901760, %v1468_v60  ;;  %1836 = vmatpush.msra.mxu1 %v1675_v22 }
 0x44c   : > { %1782 = vmatpush.msrb.mxu3 %v3869_v33  ;;  %1813 = vmatpush.msra.mxu0 %v1718_v37 }
 0x44d   : > { %1470 = vmatmul.f32.vlgmr.msrb.gmra.mxu2 %v1469_v62  ;;  %1626 = vmatmul.f32.vlgmr.msra.gmra.mxu3 %v1465_v56 }
 0x44e   : > { %1747 = vmatpush.msrb.mxu2 %v1705_v24  ;;  %1817 = vmatpush.msra.mxu0 %v1724_v41  ;;  %v1654_v41 = vperm.slane %v3852_v44, 3 }
 0x44f   : > { %1688 = vmatmul.f32.vlgmr.msrb.gmra.mxu0 %v3806_v61  ;;  %v1852_v61 = vld [vmem:[#allocation14 + $0x20] sm:$0xff]  ;;  %1838 = vmatpush.msra.mxu1 %v1677_v25 }
 0x450   : > { %1750 = vmatpush.msrb.mxu2 %v1711_v29  ;;  %v3882_v49 = vand.u32 4294901760, %v1852_v61  ;;  %1943 = vmatpush.msrb.mxu0 %v1901_v48 }
 0x451   : > { %1729 = vmatmul.f32.vlgmr.msrb.gmra.mxu1 %v3791_v51 }
 0x452   : > { %1753 = vmatpush.msrb.mxu2 %v1717_v34  ;;  %v1907_v52 = vsub.f32 %v1852_v61, %v3882_v49  ;;  %1840 = vmatpush.msra.mxu1 %v3866_v28 }
 0x454   : > { %1756 = vmatpush.msrb.mxu2 %v1723_v38  ;;  %1946 = vmatpush.msrb.mxu0 %v1907_v52 }
 0x455   : > { %1601 = vmatmul.f32.vlgmr.msra.gmra.mxu2 %v1465_v56  ;;  %1786 = vmatmul.f32.vlgmr.msrb.gmra.mxu3 %v3799_v57  ;;  %v1902_v57 = vand.u32 4294901760, %v1901_v48  ;;  %v1908_v56 = vand.u32 4294901760, %v1907_v52 }
 0x456   : > { %1872 = vmatpush.msra.mxu2 %v3878_v46  ;;  %1842 = vmatpush.msra.mxu1 %v3869_v33 }
 0x457   : > { %1819 = vmatmul.f32.vlgmr.msra.gmra.mxu0 %v3791_v51  ;;  %v1903_v55 = vsub.f32 %v1901_v48, %v1902_v57  ;;  %v1909_v62 = vsub.f32 %v1907_v52, %v1908_v56 }
 0x458   : > { %1874 = vmatpush.msra.mxu2 %v3882_v49  ;;  %1972 = vmatpush.msrb.mxu1 %v3878_v46 }
 0x459   : > { %v1904_v60 = vand.u32 4294901760, %v1903_v55  ;;  %1844 = vmatmul.f32.vlgmr.msra.gmra.mxu1 %v3791_v51 }
 0x45a   : > { %1974 = vmatpush.msrb.mxu1 %v3882_v49 }
 0x45b   : > { %1905 = vmatpush.msra.mxu3 %v1904_v60 }
 0x45d   : > { %1759 = vmatmul.f32.vlgmr.msrb.gmra.mxu2 %v3795_v54  ;;  %v1848_v54 = vld [vmem:[#allocation14] sm:$0xff] }
 0x45e   : > { %v3891_v59 = vand.u32 4294901760, %v1848_v54 }
 0x4c4   : > { %v1542_v4 = vpop.f32.mrf.mxu0 }
 0x4c6   : > { %v1569_v6 = vpop.f32.mrf.mxu1 }
 0x4c8   : > { %v1512_v0 = vpop.f32.mrf.mxu3 }
 0x4ce   : > { %v1730_v52 = vpop.f32.mrf.mxu1 }
 0x4d0   : > { %v1471_v1 = vpop.f32.mrf.mxu2  ;;  %v1627_v7 = vpop.f32.mrf.mxu3 }
 0x4d1   : > { %v1472_v2 = vadd.f32 %v1471_v1, %v1441_v63  ;;  %v1910_v1 = vand.u32 4294901760, %v1909_v62 }
 0x4d3   : > { %v1513_v3 = vadd.f32 %v1512_v0, %v1472_v2  ;;  %v1919_v0 = vsub.f32 %v1848_v54, %v3891_v59  ;;  %1911 = vmatpush.msra.mxu3 %v1910_v1 }
 0x4d5   : > { %v1543_v5 = vadd.f32 %v1542_v4, %v1513_v3  ;;  %v1920_v3 = vand.u32 4294901760, %v1919_v0  ;;  %v1855_v4 = vld [vmem:[#allocation14 + $0x38] sm:$0xff] }
 0x4d6   : > { %v1845_v60 = vpop.f32.mrf.mxu1 }
 0x4d7   : > { %v1570_v9 = vadd.f32 %v1569_v6, %v1543_v5  ;;  %v1921_v6 = vsub.f32 %v1919_v0, %v1920_v3 }
 0x4d8   : > { %v1602_v10 = vpop.f32.mrf.mxu2 }
 0x4d9   : > { %v1603_v11 = vadd.f32 %v1602_v10, %v1570_v9  ;;  %v3899_v9 = vand.u32 4294901760, %v1855_v4  ;;  %v1853_v10 = vld [vmem:[#allocation14 + $0x28] sm:$0xff] }
 0x4db   : > { %v1628_v12 = vadd.f32 %v1627_v7, %v1603_v11  ;;  %v1922_v11 = vand.u32 4294901760, %v1921_v6  ;;  %v3904_v7 = vsub.f32 %v1855_v4, %v3899_v9 }
 0x4dd   : > { %v1630_v13 = vmax.f32 %v1628_v12, 0.0  ;;  %v3906_v12 = vand.u32 4294901760, %v1853_v10  ;;  %v2087_v51 = vand.u32 4294901760, %v3904_v7 }
 0x4df   : > { %v1631_v14 = vadd.f32 %v1630_v13, %v1436_v53  ;;  %v3886_v53 = vand.u32 4294901760, %v1850_v50  ;;  %v1851_v13 = vld [vmem:[#allocation14 + $0x18] sm:$0xff] }
 0x4e0   : > { %v1760_v54 = vpop.f32.mrf.mxu2 }
 0x4e1   : > { %v1632_v15 = vsel %vm512_vm0, %v1631_v14, 0.0  ;;  %v1913_v58 = vsub.f32 %v1850_v50, %v3886_v53  ;;  %1876 = vmatpush.msra.mxu2 %v3886_v53  ;;  %1976 = vmatpush.msrb.mxu1 %v3886_v53 }
 0x4e2   : > { %1633 = vadd.xlane.f32.xlu2 %v1632_v15  ;;  %v3911_v15 = vand.u32 4294901760, %v1851_v13 }
 0x4e3   : > { %v1914_v63 = vand.u32 4294901760, %v1913_v58  ;;  %1949 = vmatpush.msrb.mxu0 %v1913_v58  ;;  %1878 = vmatpush.msra.mxu2 %v3891_v59 }
 0x4e4   : > { %v3925_v23 = vsub.f32 %v1851_v13, %v3911_v15  ;;  %1978 = vmatpush.msrb.mxu1 %v3891_v59 }
 0x4e5   : > { %v1915_v2 = vsub.f32 %v1913_v58, %v1914_v63  ;;  %1952 = vmatpush.msrb.mxu0 %v1919_v0  ;;  %2001 = vmatpush.msrb.mxu2 %v1902_v57 }
 0x4e6   : > { %v2099_v27 = vand.u32 4294901760, %v3925_v23 }
 0x4e7   : > { %v1916_v5 = vand.u32 4294901760, %v1915_v2  ;;  %2057 = vmatpush.msra.mxu0 %v3899_v9  ;;  %2005 = vmatpush.msrb.mxu2 %v1908_v56  ;;  %v1787_v56 = vpop.f32.mrf.mxu3 }
 0x4e8   : > { %v2100_v30 = vsub.f32 %v3925_v23, %v2099_v27 }
 0x4e9   : > { %1917 = vmatpush.msra.mxu3 %v1916_v5  ;;  %2059 = vmatpush.msra.mxu0 %v3906_v12 }
 0x4ea   : > { %2009 = vmatpush.msrb.mxu2 %v1914_v63  ;;  %v2101_v32 = vand.u32 4294901760, %v2100_v30 }
 0x4eb   : > { %1923 = vmatpush.msra.mxu3 %v1922_v11  ;;  %2061 = vmatpush.msra.mxu0 %v3911_v15 }
 0x4ec   : > { %2013 = vmatpush.msrb.mxu2 %v1920_v3 }
 0x4ed   : > { %2032 = vmatpush.msrb.mxu3 %v3878_v46 }
 0x4ef   : > { %2034 = vmatpush.msrb.mxu3 %v3882_v49 }
 0x4f1   : > { %2036 = vmatpush.msrb.mxu3 %v3886_v53 }
 0x4f3   : > { %2038 = vmatpush.msrb.mxu3 %v3891_v59 }
 0x555   : > { %v1634_v16 = vpop.xlane.xlu2 %1633 }
 0x556   : > { %v1635_v17 = vmul.f32 %v1634_v16, %v3843_v8  ;;  %v3914_v16 = vsub.f32 %v1853_v10, %v3906_v12 }
 0x558   : > { %v3861_v18 = vsub.f32 %v1631_v14, %v1635_v17  ;;  %v2093_v21 = vand.u32 4294901760, %v3914_v16 }
 0x55a   : > { %v1637_v19 = vmul.f32 %v3861_v18, %v3861_v18  ;;  %v2094_v26 = vsub.f32 %v3914_v16, %v2093_v21 }
 0x55c   : > { %v1638_v20 = vsel %vm512_vm0, %v1637_v19, 0.0  ;;  %v1849_v19 = vld [vmem:[#allocation14 + $0x8] sm:$0xff]  ;;  %v2095_v29 = vand.u32 4294901760, %v2094_v26 }
 0x55d   : > { %1639 = vadd.xlane.f32.xlu2 %v1638_v20  ;;  %v2088_v20 = vsub.f32 %v3904_v7, %v2087_v51  ;;  %v3922_v22 = vand.u32 4294901760, %v1849_v19 }
 0x55f   : > { %v2089_v25 = vand.u32 4294901760, %v2088_v20  ;;  %v2104_v28 = vsub.f32 %v1849_v19, %v3922_v22  ;;  %2063 = vmatpush.msra.mxu0 %v3922_v22 }
 0x561   : > { %2090 = vmatpush.msra.mxu1 %v2089_v25  ;;  %v2105_v31 = vand.u32 4294901760, %v2104_v28 }
 0x563   : > { %2096 = vmatpush.msra.mxu1 %v2095_v29  ;;  %v2106_v33 = vsub.f32 %v2104_v28, %v2105_v31 }
 0x565   : > { %2102 = vmatpush.msra.mxu1 %v2101_v32  ;;  %v2107_v34 = vand.u32 4294901760, %v2106_v33 }
 0x567   : > { %2108 = vmatpush.msra.mxu1 %v2107_v34 }
 0x5d0   : > { %v1640_v14 = vpop.xlane.xlu2 %1639 }
 0x5d1   : > { %v1641_v17 = vmul.f32 %v1640_v14, %v3843_v8 }
 0x5d3   : > { %v1642_v24 = vadd.f32 1e-05, %v1641_v17 }
 0x5d5   : > { %3128 = vrsqrt.f32 %v1642_v24  ;;  %vm1649_vm11 = vweird.f32 %v1642_v24 }
 0x5db   : > { %v3129_v35 = vpop.eup %3128 }
 0x5dc   : > { %v1644_v36 = vmul.f32 %v3129_v35, %v1642_v24  ;;  %vm1650_vm10 = vweird.f32 %v3129_v35 }
 0x5dd   : > { %vm1651_vm12 = vmor %vm1649_vm11, %vm1650_vm10 }
 0x5de   : > { %v1645_v37 = vmul.f32 %v3129_v35, %v1644_v36 }
 0x5e0   : > { %v1646_v38 = vmul.f32 0.5, %v1645_v37 }
 0x5e2   : > { %v1647_v39 = vsub.f32 1.5, %v1646_v38 }
 0x5e4   : > { %v1648_v40 = vmul.f32 %v3129_v35, %v1647_v39 }
 0x5e6   : > { %v1652_v42 = vsel %vm1651_vm12, %v3129_v35, %v1648_v40 }
 0x5e7   : > { %v1653_v45 = vmul.f32 %v1652_v42, %v3861_v18  ;;  %v1689_v18 = vpop.f32.mrf.mxu0 }
 0x5e8   : > { %v1731_v53 = vadd.f32 %v1730_v52, %v1689_v18 }
 0x5e9   : > { %v1655_v46 = vmul.f32 %v1654_v41, %v1653_v45 }
 0x5ea   : > { %v1761_v55 = vadd.f32 %v1760_v54, %v1731_v53 }
 0x5eb   : > { %v1657_v61 = vadd.f32 %v1656_v43, %v1655_v46 }
 0x5ec   : > { %v1788_v58 = vadd.f32 %v1787_v56, %v1761_v55 }
 0x5ed   : > { %v1857_v47 = vsel %vm512_vm0, %v1657_v61, 0 }
 0x5ee   : > { %v1879_v48 = vand.u32 4294901760, %v1857_v47 }
 0x5ef   : > { %v1820_v59 = vpop.f32.mrf.mxu0 }
 0x5f0   : > { %1925 = vmatmul.f32.vlgmr.msra.gmra.mxu3 %v1879_v48  ;;  %v1880_v49 = vsub.f32 %v1857_v47, %v1879_v48  ;;  %v1821_v62 = vadd.f32 %v1820_v59, %v1788_v58 }
 0x5f1   : > { %2157 = vmatpush.msra.mxu3 %v3899_v9 }
 0x5f2   : > { %1955 = vmatmul.f32.vlgmr.msrb.gmra.mxu0 %v1880_v49  ;;  %v1881_v50 = vand.u32 4294901760, %v1880_v49  ;;  %v1846_v63 = vadd.f32 %v1845_v60, %v1821_v62 }
 0x5f3   : > { %2159 = vmatpush.msra.mxu3 %v3906_v12  ;;  %2186 = vmatpush.msrb.mxu0 %v2087_v51 }
 0x5f4   : > { %1982 = vmatmul.f32.vlgmr.msrb.gmra.mxu1 %v1881_v50  ;;  %v1882_v57 = vsub.f32 %v1880_v49, %v1881_v50  ;;  %v2246_v1 = vand.u32 4294901760, %v1846_v63 }
 0x5f5   : > { %2161 = vmatpush.msra.mxu3 %v3911_v15  ;;  %2190 = vmatpush.msrb.mxu0 %v2093_v21 }
 0x5f6   : > { %v1883_v44 = vand.u32 4294901760, %v1882_v57  ;;  %2217 = vmatpush.msrb.mxu1 %v3899_v9  ;;  %v2247_v9 = vsub.f32 %v1846_v63, %v2246_v1 }
 0x5f7   : > { %2163 = vmatpush.msra.mxu3 %v3922_v22  ;;  %2194 = vmatpush.msrb.mxu0 %v2099_v27 }
 0x5f8   : > { %1884 = vmatmul.f32.vlgmr.msra.gmra.mxu2 %v1883_v44  ;;  %2040 = vmatmul.f32.vlgmr.msrb.gmra.mxu3 %v1879_v48 }
 0x5f9   : > { %2219 = vmatpush.msrb.mxu1 %v3906_v12  ;;  %2128 = vmatpush.msra.mxu2 %v3904_v7  ;;  %v2248_v12 = vand.u32 4294901760, %v2247_v9 }
 0x5fa   : > { %2069 = vmatmul.f32.vlgmr.msra.gmra.mxu0 %v1883_v44 }
 0x5fb   : > { %2198 = vmatpush.msrb.mxu0 %v2105_v31  ;;  %2221 = vmatpush.msrb.mxu1 %v3911_v15 }
 0x5fc   : > { %2110 = vmatmul.f32.vlgmr.msra.gmra.mxu1 %v1879_v48  ;;  %2131 = vmatpush.msra.mxu2 %v3914_v16  ;;  %v2249_v16 = vsub.f32 %v2247_v9, %v2248_v12 }
 0x5fd   : > { %2223 = vmatpush.msrb.mxu1 %v3922_v22 }
 0x5fe   : > { %2134 = vmatpush.msra.mxu2 %v3925_v23  ;;  %v2250_v22 = vand.u32 4294901760, %v2249_v16 }
 0x600   : > { %2015 = vmatmul.f32.vlgmr.msrb.gmra.mxu2 %v1879_v48  ;;  %2167 = vmatmul.f32.vlgmr.msra.gmra.mxu3 %v1881_v50 }
 0x601   : > { %2137 = vmatpush.msra.mxu2 %v2104_v28 }
 0x602   : > { %2200 = vmatmul.f32.vlgmr.msrb.gmra.mxu0 %v1879_v48 }
 0x604   : > { %2225 = vmatmul.f32.vlgmr.msrb.gmra.mxu1 %v1879_v48 }
 0x608   : > { %2140 = vmatmul.f32.vlgmr.msra.gmra.mxu2 %v1880_v49 }
 0x66f   : > { %v1956_v2 = vpop.f32.mrf.mxu0 }
 0x671   : > { %v1983_v5 = vpop.f32.mrf.mxu1 }
 0x673   : > { %v1926_v0 = vpop.f32.mrf.mxu3 }
 0x677   : > { %v2070_v14 = vpop.f32.mrf.mxu0 }
 0x679   : > { %v2111_v15 = vpop.f32.mrf.mxu1 }
 0x67a   : > { %v2112_v19 = vadd.f32 %v2111_v15, %v2070_v14 }
 0x67b   : > { %v1885_v3 = vpop.f32.mrf.mxu2  ;;  %v2041_v11 = vpop.f32.mrf.mxu3 }
 0x67c   : > { %v1927_v4 = vadd.f32 %v1926_v0, %v1885_v3 }
 0x67e   : > { %v1957_v6 = vadd.f32 %v1956_v2, %v1927_v4 }
 0x67f   : > { %v2201_v28 = vpop.f32.mrf.mxu0 }
 0x680   : > { %v1984_v10 = vadd.f32 %v1983_v5, %v1957_v6 }
 0x681   : > { %v2226_v31 = vpop.f32.mrf.mxu1 }
 0x683   : > { %v2016_v7 = vpop.f32.mrf.mxu2  ;;  %v2168_v25 = vpop.f32.mrf.mxu3 }
 0x684   : > { %v2017_v13 = vadd.f32 %v2016_v7, %v1984_v10 }
 0x686   : > { %v2042_v51 = vadd.f32 %v2041_v11, %v2017_v13 }
 0x688   : > { %v2244_v17 = vand.u32 4294901760, %v2042_v51 }
 0x68a   : > { %v2271_v20 = vsub.f32 %v2042_v51, %v2244_v17  ;;  %2245 = vmatpush.xpose.msrb.mxu2 %v2244_v17  ;;  %2321 = vmatpush.xpose.msra.mxu1 %v2244_v17 }
 0x68b   : > { %v2141_v21 = vpop.f32.mrf.mxu2 }
 0x68c   : > { %v2142_v23 = vadd.f32 %v2141_v21, %v2112_v19  ;;  %2298 = vmatpush.xpose.msra.mxu0 %v2271_v20  ;;  %v2272_v24 = vand.u32 4294901760, %v2271_v20 }
 0x68d   : > { %2251 = vmatmul.f32.vlgmr.msrb.gmra.mxu2 %v2250_v22  ;;  %2325 = vmatmul.f32.vlgmr.msra.gmra.mxu1 %v2248_v12  ;;  %v3138_v22 = vld [vmem:[%s3705_s4] sm:$0xff] }
 0x68e   : > { %v2169_v26 = vadd.f32 %v2168_v25, %v2142_v23  ;;  %2347 = vmatpush.xpose.msra.mxu2 %v2272_v24  ;;  %v2273_v27 = vsub.f32 %v2271_v20, %v2272_v24 }
 0x68f   : > { %2301 = vmatmul.f32.vlgmr.msra.gmra.mxu0 %v2247_v9 }
 0x690   : > { %v2202_v29 = vadd.f32 %v2201_v28, %v2169_v26  ;;  %v2274_v30 = vand.u32 4294901760, %v2273_v27 }
 0x692   : > { %v2227_v32 = vadd.f32 %v2226_v31, %v2202_v29  ;;  %2275 = vmatpush.xpose.msrb.mxu3 %v2274_v30  ;;  %v2579_v30 = vld [vmem:[#allocation16 + $0x18] sm:$0xff] }
 0x693   : > { %v2596_v31 = vand.u32 4294901760, %v2579_v30 }
 0x694   : > { %v2418_v33 = vand.u32 4294901760, %v2227_v32 }
 0x695   : > { %2277 = vmatmul.f32.vlgmr.msrb.gmra.mxu3 %v2246_v1  ;;  %2349 = vmatmul.f32.vlgmr.msra.gmra.mxu2 %v2246_v1 }
 0x696   : > { %2369 = vmatpush.xpose.msra.mxu3 %v2244_v17  ;;  %2419 = vmatpush.msrb.mxu0 %v2418_v33  ;;  %v2445_v34 = vsub.f32 %v2227_v32, %v2418_v33  ;;  %v2578_v32 = vld [vmem:[#allocation16 + $0x10] sm:$0xff] }
 0x698   : > { %2472 = vmatpush.msrb.mxu2 %v2445_v34  ;;  %v2446_v35 = vand.u32 4294901760, %v2445_v34 }
 0x69a   : > { %2495 = vmatpush.msrb.mxu3 %v2418_v33  ;;  %2521 = vmatpush.msra.mxu0 %v2446_v35  ;;  %v2447_v36 = vsub.f32 %v2445_v34, %v2446_v35  ;;  %v2598_v34 = vand.u32 4294901760, %v2578_v32  ;;  %v2577_v35 = vld [vmem:[#allocation16 + $0x8] sm:$0xff] }
 0x69b   : > { %2597 = vmatpush.msra.mxu2 %v2596_v31 }
 0x69c   : > { %v2448_v37 = vand.u32 4294901760, %v2447_v36 }
 0x69d   : > { %2371 = vmatmul.f32.vlgmr.msra.gmra.mxu3 %v2246_v1  ;;  %2599 = vmatpush.msra.mxu2 %v2598_v34 }
 0x69e   : > { %2449 = vmatpush.msrb.mxu1 %v2448_v37  ;;  %v2632_v37 = vsub.f32 %v2578_v32, %v2598_v34 }
 0x6a0   : > { %2543 = vmatpush.msra.mxu1 %v2418_v33  ;;  %v2626_v33 = vsub.f32 %v2579_v30, %v2596_v31 }
 0x6a2   : > { %v2627_v36 = vand.u32 4294901760, %v2626_v33 }
 0x70a   : > { %v2326_v43 = vpop.f32.mrf.mxu1 }
 0x70c   : > { %v2302_v41 = vpop.f32.mrf.mxu0 }
 0x710   : > { %v2252_v38 = vpop.f32.mrf.mxu2 }
 0x718   : > { %v2278_v39 = vpop.f32.mrf.mxu3  ;;  %v2350_v46 = vpop.f32.mrf.mxu2 }
 0x719   : > { %v2279_v40 = vadd.f32 %v2278_v39, %v2252_v38  ;;  %v2600_v38 = vand.u32 4294901760, %v2577_v35  ;;  %v2576_v39 = vld [vmem:[#allocation16] sm:$0xff] }
 0x71b   : > { %v2303_v42 = vadd.f32 %v2302_v41, %v2279_v40  ;;  %v2628_v40 = vsub.f32 %v2626_v33, %v2627_v36  ;;  %v2633_v41 = vand.u32 4294901760, %v2632_v37  ;;  %2601 = vmatpush.msra.mxu2 %v2600_v38 }
 0x71d   : > { %v2327_v45 = vadd.f32 %v2326_v43, %v2303_v42  ;;  %v2638_v42 = vsub.f32 %v2577_v35, %v2600_v38  ;;  %v2602_v43 = vand.u32 4294901760, %v2576_v39 }
 0x71f   : > { %v2351_v61 = vadd.f32 %v2350_v46, %v2327_v45  ;;  %v2629_v45 = vand.u32 4294901760, %v2628_v40  ;;  %v2634_v46 = vsub.f32 %v2632_v37, %v2633_v41  ;;  %2603 = vmatpush.msra.mxu2 %v2602_v43 }
 0x720   : > { %v2372_v47 = vpop.f32.mrf.mxu3 }
 0x721   : > { %v2373_v48 = vadd.f32 %v2372_v47, %v2351_v61  ;;  %v2639_v61 = vand.u32 4294901760, %v2638_v42  ;;  %v2644_v47 = vsub.f32 %v2576_v39, %v2602_v43  ;;  %2630 = vmatpush.msra.mxu3 %v2629_v45 }
 0x723   : > { %v2375_v49 = vmul.f32 0.25, %v2373_v48  ;;  %v2635_v48 = vand.u32 4294901760, %v2634_v46 }
 0x725   : > { %v2376_v50 = vsel %vm1229_vm1, %v2375_v49, -inf  ;;  %2636 = vmatpush.msra.mxu3 %v2635_v48 }
 0x726   : > { %2377 = vmax.xlane.f32.xlu0 %v2376_v50  ;;  %v2645_v50 = vand.u32 4294901760, %v2644_v47 }
 0x799   : > { %v2378_v57 = vpop.xlane.xlu0 %2377 }
 0x79a   : > { %v2379_v44 = vsub.f32 %v2375_v49, %v2378_v57  ;;  %v2640_v49 = vsub.f32 %v2638_v42, %v2639_v61 }
 0x79c   : > { %v2380_v18 = vmul.f32 1.442695, %v2379_v44  ;;  %v2641_v57 = vand.u32 4294901760, %v2640_v49  ;;  %v2646_v44 = vsub.f32 %v2644_v47, %v2645_v50 }
 0x79e   : > { %3130 = vpow2.f32 %v2380_v18  ;;  %2642 = vmatpush.msra.mxu3 %v2641_v57  ;;  %v2647_v18 = vand.u32 4294901760, %v2646_v44 }
 0x7a0   : > { %2648 = vmatpush.msra.mxu3 %v2647_v18 }
 0x7a4   : > { %v3131_v52 = vpop.eup %3130 }
 0x7a5   : > { %v2382_v53 = vsel %vm1229_vm1, %v3131_v52, 0.0 }
 0x7a6   : > { %2383 = vadd.xlane.f32.xlu1 %v2382_v53 }
 0x819   : > { %v2384_v54 = vpop.xlane.xlu1 %2383 }
 0x81a   : > { %3132 = vrcp.f32 %v2384_v54  ;;  %v2396_v59 = vand.u32 2147483648, %v2384_v54  ;;  %v2394_v62 = vand.u32 2147483647, %v2384_v54  ;;  %vm2390_vm14 = vweird.f32 %v2384_v54 }
 0x81c   : > { %v2397_v0 = vor.u32 1.1754944e-38, %v2396_v59  ;;  %vm2395_vm2 = vcmp.eq.f32.partialorder %v2394_v62, 8.507059e+37 }
 0x820   : > { %v3133_v55 = vpop.eup %3132 }
 0x821   : > { %v2386_v56 = vmul.f32 %v3133_v55, %v2384_v54  ;;  %vm2391_vm13 = vweird.f32 %v3133_v55 }
 0x822   : > { %vm2392_vm15 = vmor %vm2390_vm14, %vm2391_vm13 }
 0x823   : > { %v2387_v58 = vsub.f32 1.0, %v2386_v56 }
 0x825   : > { %v2388_v60 = vmul.f32 %v3133_v55, %v2387_v58 }
 0x827   : > { %v2389_v63 = vadd.f32 %v3133_v55, %v2388_v60  ;;  %v3967_v60 = vld [vmem:[%s4025_s9] sm:$0xff] }
 0x828   : > { %v2795_v46 = vperm.slane %v3967_v60, 4 }
 0x829   : > { %v2393_v1 = vsel %vm2392_vm15, %v3133_v55, %v2389_v63 }
 0x82a   : > { %v2398_v2 = vsel %vm2395_vm2, %v2397_v0, %v2393_v1  ;;  %v2572_v0 = vperm.slane %v3967_v60, 1 }
 0x82b   : > { %v2399_v3 = vmul.f32 %v3131_v52, %v2398_v2 }
 0x82d   : > { %v2401_v4 = vsel %vm1229_vm1, %v2399_v3, 0  ;;  %v2574_v3 = vperm.slane %v3967_v60, 2 }
 0x82e   : > { %v2420_v5 = vand.u32 4294901760, %v2401_v4 }
 0x830   : > { %2451 = vmatmul.f32.vlgmr.msrb.gmra.mxu1 %v2420_v5  ;;  %v2421_v6 = vsub.f32 %v2401_v4, %v2420_v5 }
 0x831   : > { %2697 = vmatpush.msrb.mxu1 %v2596_v31 }
 0x832   : > { %2475 = vmatmul.f32.vlgmr.msrb.gmra.mxu2 %v2421_v6  ;;  %v2422_v9 = vand.u32 4294901760, %v2421_v6 }
 0x833   : > { %2699 = vmatpush.msrb.mxu1 %v2598_v34  ;;  %2726 = vmatpush.msrb.mxu2 %v2627_v36 }
 0x834   : > { %2499 = vmatmul.f32.vlgmr.msrb.gmra.mxu3 %v2422_v9  ;;  %v2423_v10 = vsub.f32 %v2421_v6, %v2422_v9 }
 0x835   : > { %2701 = vmatpush.msrb.mxu1 %v2600_v38  ;;  %2730 = vmatpush.msrb.mxu2 %v2633_v41 }
 0x836   : > { %v2424_v11 = vand.u32 4294901760, %v2423_v10  ;;  %2757 = vmatpush.msrb.mxu3 %v2596_v31 }
 0x837   : > { %2703 = vmatpush.msrb.mxu1 %v2602_v43  ;;  %2734 = vmatpush.msrb.mxu2 %v2639_v61 }
 0x838   : > { %2425 = vmatmul.f32.vlgmr.msrb.gmra.mxu0 %v2424_v11  ;;  %2545 = vmatmul.f32.vlgmr.msra.gmra.mxu1 %v2420_v5 }
 0x839   : > { %2668 = vmatpush.msrb.mxu0 %v2626_v33  ;;  %2738 = vmatpush.msrb.mxu2 %v2645_v50 }
 0x83a   : > { %2759 = vmatpush.msrb.mxu3 %v2598_v34 }
 0x83b   : > { %2671 = vmatpush.msrb.mxu0 %v2632_v37 }
 0x83c   : > { %2761 = vmatpush.msrb.mxu3 %v2600_v38 }
 0x83d   : > { %2674 = vmatpush.msrb.mxu0 %v2638_v42 }
 0x83e   : > { %2763 = vmatpush.msrb.mxu3 %v2602_v43  ;;  %v2793_v43 = vperm.slane %v3967_v60, 3 }
 0x83f   : > { %2677 = vmatpush.msrb.mxu0 %v2644_v47 }
 0x840   : > { %2523 = vmatmul.f32.vlgmr.msra.gmra.mxu0 %v2420_v5 }
 0x8ad   : > { %v2452_v7 = vpop.f32.mrf.mxu1 }
 0x8b5   : > { %v2426_v12 = vpop.f32.mrf.mxu0  ;;  %v2476_v14 = vpop.f32.mrf.mxu2 }
 0x8b6   : > { %v2453_v13 = vadd.f32 %v2452_v7, %v2426_v12  ;;  %v2546_v20 = vpop.f32.mrf.mxu1 }
 0x8b7   : > { %v2500_v15 = vpop.f32.mrf.mxu3 }
 0x8b8   : > { %v2477_v51 = vadd.f32 %v2476_v14, %v2453_v13  ;;  %v2580_v13 = vperm.slane %v3967_v60, 0 }
 0x8ba   : > { %v2501_v16 = vadd.f32 %v2500_v15, %v2477_v51 }
 0x8bd   : > { %v2524_v17 = vpop.f32.mrf.mxu0 }
 0x8be   : > { %v2525_v19 = vadd.f32 %v2524_v17, %v2501_v16 }
 0x8c0   : > { %v2547_v21 = vadd.f32 %v2546_v20, %v2525_v19 }
 0x8c2   : > { %v2549_v23 = vadd.f32 %v3138_v22, %v2547_v21 }
 0x8c4   : > { %v2550_v24 = vsel %vm512_vm0, %v2549_v23, 0.0 }
 0x8c5   : > { %2551 = vadd.xlane.f32.xlu2 %v2550_v24 }
 0x938   : > { %v2552_v25 = vpop.xlane.xlu2 %2551 }
 0x939   : > { %v2553_v26 = vmul.f32 %v2552_v25, %v3843_v8 }
 0x93b   : > { %v3958_v27 = vsub.f32 %v2549_v23, %v2553_v26 }
 0x93d   : > { %v2555_v28 = vmul.f32 %v3958_v27, %v3958_v27 }
 0x93f   : > { %v2556_v29 = vsel %vm512_vm0, %v2555_v28, 0.0 }
 0x940   : > { %2557 = vadd.xlane.f32.xlu0 %v2556_v29 }
 0x9b3   : > { %v2558_v52 = vpop.xlane.xlu0 %2557 }
 0x9b4   : > { %v2559_v53 = vmul.f32 %v2558_v52, %v3843_v8 }
 0x9b6   : > { %v2560_v54 = vadd.f32 1e-05, %v2559_v53 }
 0x9b8   : > { %3134 = vrsqrt.f32 %v2560_v54  ;;  %vm2567_vm3 = vweird.f32 %v2560_v54 }
 0x9be   : > { %v3135_v55 = vpop.eup %3134 }
 0x9bf   : > { %v2562_v56 = vmul.f32 %v3135_v55, %v2560_v54  ;;  %vm2568_vm1 = vweird.f32 %v3135_v55 }
 0x9c0   : > { %vm2569_vm4 = vmor %vm2567_vm3, %vm2568_vm1 }
 0x9c1   : > { %v2563_v58 = vmul.f32 %v3135_v55, %v2562_v56 }
 0x9c3   : > { %v2564_v59 = vmul.f32 0.5, %v2563_v58 }
 0x9c5   : > { %v2565_v62 = vsub.f32 1.5, %v2564_v59 }
 0x9c7   : > { %v2566_v63 = vmul.f32 %v3135_v55, %v2565_v62 }
 0x9c9   : > { %v2570_v1 = vsel %vm2569_vm4, %v3135_v55, %v2566_v63 }
 0x9ca   : > { %v2571_v2 = vmul.f32 %v2570_v1, %v3958_v27 }
 0x9cc   : > { %v2573_v4 = vmul.f32 %v2572_v0, %v2571_v2 }
 0x9ce   : > { %v2575_v5 = vadd.f32 %v2574_v3, %v2573_v4 }
 0x9d0   : > { %v2582_v6 = vsel %vm512_vm0, %v2575_v5, 0 }
 0x9d1   : > { %v2604_v9 = vand.u32 4294901760, %v2582_v6 }
 0x9d3   : > { %2650 = vmatmul.f32.vlgmr.msra.gmra.mxu3 %v2604_v9  ;;  %v2605_v10 = vsub.f32 %v2582_v6, %v2604_v9 }
 0x9d5   : > { %2680 = vmatmul.f32.vlgmr.msrb.gmra.mxu0 %v2605_v10  ;;  %v2606_v11 = vand.u32 4294901760, %v2605_v10 }
 0x9d7   : > { %2707 = vmatmul.f32.vlgmr.msrb.gmra.mxu1 %v2606_v11  ;;  %v2607_v7 = vsub.f32 %v2605_v10, %v2606_v11 }
 0x9d9   : > { %v2608_v12 = vand.u32 4294901760, %v2607_v7 }
 0x9db   : > { %2609 = vmatmul.f32.vlgmr.msra.gmra.mxu2 %v2608_v12  ;;  %2765 = vmatmul.f32.vlgmr.msrb.gmra.mxu3 %v2604_v9 }
 0x9e3   : > { %2740 = vmatmul.f32.vlgmr.msrb.gmra.mxu2 %v2604_v9 }
 0xa52   : > { %v2681_v17 = vpop.f32.mrf.mxu0 }
 0xa54   : > { %v2708_v20 = vpop.f32.mrf.mxu1 }
 0xa56   : > { %v2651_v14 = vpop.f32.mrf.mxu3 }
 0xa5e   : > { %v2610_v51 = vpop.f32.mrf.mxu2  ;;  %v2766_v24 = vpop.f32.mrf.mxu3 }
 0xa5f   : > { %v2611_v15 = vadd.f32 %v2610_v51, %v2580_v13 }
 0xa61   : > { %v2652_v16 = vadd.f32 %v2651_v14, %v2611_v15 }
 0xa63   : > { %v2682_v19 = vadd.f32 %v2681_v17, %v2652_v16 }
 0xa65   : > { %v2709_v21 = vadd.f32 %v2708_v20, %v2682_v19 }
 0xa66   : > { %v2741_v22 = vpop.f32.mrf.mxu2 }
 0xa67   : > { %v2742_v23 = vadd.f32 %v2741_v22, %v2709_v21 }
 0xa69   : > { %v2767_v25 = vadd.f32 %v2766_v24, %v2742_v23 }
 0xa6b   : > { %v2769_v26 = vmax.f32 %v2767_v25, 0.0 }
 0xa6d   : > { %v2770_v27 = vadd.f32 %v2769_v26, %v2575_v5 }
 0xa6f   : > { %v2771_v28 = vsel %vm512_vm0, %v2770_v27, 0.0 }
 0xa70   : > { %2772 = vadd.xlane.f32.xlu1 %v2771_v28 }
 0xae3   : > { %v2773_v29 = vpop.xlane.xlu1 %2772 }
 0xae4   : > { %v2774_v30 = vmul.f32 %v2773_v29, %v3843_v8 }
 0xae6   : > { %v2775_v31 = vsub.f32 %v2770_v27, %v2774_v30 }
 0xae8   : > { %v2776_v32 = vmul.f32 %v2775_v31, %v2775_v31 }
 0xaea   : > { %v2777_v33 = vsel %vm512_vm0, %v2776_v32, 0.0 }
 0xaeb   : > { %2778 = vadd.xlane.f32.xlu2 %v2777_v33 }
 0xb5e   : > { %v2779_v34 = vpop.xlane.xlu2 %2778 }
 0xb5f   : > { %v2780_v35 = vmul.f32 %v2779_v34, %v3843_v8 }
 0xb61   : > { %v2781_v36 = vadd.f32 1e-05, %v2780_v35 }
 0xb63   : > { %3136 = vrsqrt.f32 %v2781_v36  ;;  %vm2788_vm6 = vweird.f32 %v2781_v36 }
 0xb69   : > { %v3137_v37 = vpop.eup %3136 }
 0xb6a   : > { %v2783_v38 = vmul.f32 %v3137_v37, %v2781_v36  ;;  %vm2789_vm5 = vweird.f32 %v3137_v37 }
 0xb6b   : > { %vm2790_vm7 = vmor %vm2788_vm6, %vm2789_vm5 }
 0xb6c   : > { %v2784_v39 = vmul.f32 %v3137_v37, %v2783_v38 }
 0xb6e   : > { %v2785_v40 = vmul.f32 0.5, %v2784_v39 }
 0xb70   : > { %v2786_v41 = vsub.f32 1.5, %v2785_v40 }
 0xb72   : > { %v2787_v42 = vmul.f32 %v3137_v37, %v2786_v41 }
 0xb74   : > { %v2791_v8 = vsel %vm2790_vm7, %v3137_v37, %v2787_v42 }
 0xb75   : > { %v2792_v45 = vmul.f32 %v2791_v8, %v2775_v31 }
 0xb77   : > { %v2794_v61 = vmul.f32 %v2793_v43, %v2792_v45 }
 0xb79   : > { %v2796_v47 = vadd.f32 %v2795_v46, %v2794_v61 }
 0xb7b   : > { %2797 = vst.msk [vmem:[%s504_s3] sm:$0xff] %vm512_vm0, %v2796_v47 }
 0xb7c   : > { %3436 = shalt.err (!%p3433_p9)
}
 0xb7d   : > { %3022 = dma.vmem_to_hbm [thread:$0]  (%p3668_p5), %s2812_s11, 128, %s2814_s28, %s2799_s20  }
 0xb7e PF: > { %s2825_s18 = sand.u32 1, %s3479_s13   ;;  %p4044_p10 = scmp.ge.s32.totalorder %s3491_s16, 2 }
 0xb7f   : > { %s2826_s21 = scalar_lea.sflag [#allocation4], %s2825_s18 }
 0xb80   : > { %p3054_p13 = pnand %p4044_p10, %p3672_p6 }
 0xb82   : > { %p3055_p11 = pneg %p3054_p13 }
 0xb84   : > { %3474 = dma.done.wait (%p3055_p11), %s2826_s21, 128  }
 0xb85   : > { %3476 = vsyncadd (%p3055_p11), %s2826_s21, 4294967168  ;;  %p27_p0 = scmp.ge.s32.totalorder %s3642_s22, 4   ;;  %s4045_s13 = smov %s3483_s14 }
 0xb86   : > { %s4046_s14 = smov %s3487_s15  ;;  %s4047_s15 = smov %s3653_s19 }
 0xb87   : > { %s4048_s16 = smov %s3642_s22  ;;  %29 = sbr.rel (!%p27_p0) target bundleno = 15 (0xf), region = 137 }
 0xb8c   :  { %2832 = vsyncpa [#allocation3], 1 }
 0xb8d   :  { %2834 = vsyncpa [#allocation3 + $0x1], 1 }
 0xb8e   :  { %2835 = vsyncpa [#allocation6], 1 }
 0xb8f   :  { %2836 = vsyncpa [#allocation9], 1 }
 0xb90   :  { %2837 = vsyncpa [#allocation12], 1 }
 0xb91   :  { %2838 = vsyncpa [#allocation15], 1 }
 0xb92   :  { %2839 = vsyncpa [#allocation4], 1 }
 0xb93   :  { %2841 = vsyncpa [#allocation4 + $0x1], 1 }

</bundles_post_ra>
